<compile_context>
chip_gen: v7x
topology: tpu7x:2x2x1
jax: 0.10.0
libtpu: 0.0.40
codegen_flags: <defaults>
</compile_context>

<pallas_src>
import jax
import jax.numpy as jnp
from jax import lax
from jax.experimental import pallas as pl
from jax.experimental.pallas import tpu as pltpu

LANES = 128


def _round_up(x, m):
    return (x + m - 1) // m * m


# ---------------------------------------------------------------------------
# Fused kernel: 2x2 maxpool -> (conv3x3 + BN + ReLU) x 2, one batch per step.
# ---------------------------------------------------------------------------
def _down_fused_kernel(x_ref, w1_ref, s1_ref, b1_ref, w2_ref, s2_ref, b2_ref,
                       o_ref, pad1_ref, pad2_ref):
    # x_ref:    (1, Hh, 2, Wh, 2*Cin)  pool windows split out (free wrapper reshape)
    # w1_ref:   (9*Cin,  Cmid_p)       im2col weights, K index = (ky*3+kx)*Cin + cin
    # w2_ref:   (9*Cmid_p, Cout_p)
    # s*/b*:    (1, C*_p)              folded eval-mode BatchNorm scale / bias
    # o_ref:    (1, Hh, Wh, Cout_p)    lane-dense (Cout_p multiple of 128)
    # pad1_ref: (Hh+2, Wh+2, Cin)      VMEM scratch, zero-padded pooled input
    # pad2_ref: (Hh+2, Wh+2, Cmid_p)   VMEM scratch, zero-padded conv1 output
    Hh = o_ref.shape[1]
    Wh = o_ref.shape[2]
    Cout_p = o_ref.shape[3]
    Cin = pad1_ref.shape[2]
    Cmid_p = pad2_ref.shape[2]

    # ---- fused 2x2 max-pool -------------------------------------------------
    x = x_ref[0]                                       # (Hh, 2, Wh, 2*Cin)
    v = jnp.maximum(x[:, 0], x[:, 1])                  # rows:   (Hh, Wh, 2*Cin)
    pooled = jnp.maximum(v[..., :Cin], v[..., Cin:])   # cols:   (Hh, Wh, Cin)

    # ---- conv1: im2col + single MXU matmul, BN + ReLU epilogue --------------
    pad1_ref[...] = jnp.zeros(pad1_ref.shape, pad1_ref.dtype)
    pad1_ref[pl.ds(1, Hh), pl.ds(1, Wh), :] = pooled.astype(pad1_ref.dtype)
    cols1 = [pad1_ref[pl.ds(ky, Hh), pl.ds(kx, Wh), :].reshape(Hh * Wh, Cin)
             for ky in range(3) for kx in range(3)]
    patch1 = jnp.concatenate(cols1, axis=-1)           # (Hh*Wh, 9*Cin)
    h = jnp.dot(patch1, w1_ref[...], preferred_element_type=jnp.float32)
    h = jnp.maximum(h * s1_ref[...] + b1_ref[...], 0.0)  # (Hh*Wh, Cmid_p), f32

    # ---- conv2: im2col + single MXU matmul, BN + ReLU epilogue --------------
    pad2_ref[...] = jnp.zeros(pad2_ref.shape, pad2_ref.dtype)
    pad2_ref[pl.ds(1, Hh), pl.ds(1, Wh), :] = h.reshape(Hh, Wh, Cmid_p)
    cols2 = [pad2_ref[pl.ds(ky, Hh), pl.ds(kx, Wh), :].reshape(Hh * Wh, Cmid_p)
             for ky in range(3) for kx in range(3)]
    patch2 = jnp.concatenate(cols2, axis=-1)           # (Hh*Wh, 9*Cmid_p)
    y = jnp.dot(patch2, w2_ref[...], preferred_element_type=jnp.float32)
    y = jnp.maximum(y * s2_ref[...] + b2_ref[...], 0.0)
    o_ref[0] = y.reshape(Hh, Wh, Cout_p).astype(o_ref.dtype)


# ---------------------------------------------------------------------------
# Wrapper: layout / weight packing glue around the single fused pallas_call.
# ---------------------------------------------------------------------------
def down_forward(x_nchw, params):
    """Down: MaxPool2d(2) -> (Conv3x3->BN->ReLU) x 2.  Input/output are NCHW."""
    w1, w2 = params["w1"], params["w2"]
    s1, b1 = params["scale1"], params["bias1"]
    s2, b2 = params["scale2"], params["bias2"]

    N, Cin, H, W = x_nchw.shape
    assert H % 2 == 0 and W % 2 == 0, "MaxPool2d(2) path assumes even H, W"
    Cmid, Cout = w1.shape[0], w2.shape[0]
    Cmid_p = _round_up(Cmid, LANES)
    Cout_p = _round_up(Cout, LANES)
    Hh, Wh = H // 2, W // 2

    # NCHW -> NHWC, then split the 2x2 pool windows. The reshape of the
    # contiguous NHWC tensor is free (pure metadata), so no extra HBM copies.
    x = jnp.transpose(x_nchw, (0, 2, 3, 1)).reshape(N, Hh, 2, Wh, 2 * Cin)

    # Conv weights (OIHW) -> im2col matrices, zero-padded to lane-dense widths.
    w1m = jnp.transpose(w1, (2, 3, 1, 0)).reshape(9 * Cin, Cmid)
    w1m = jnp.pad(w1m, ((0, 0), (0, Cmid_p - Cmid))).astype(jnp.float32)
    w2t = jnp.transpose(w2, (2, 3, 1, 0))                      # (3,3,Cmid,Cout)
    w2t = jnp.pad(w2t, ((0, 0), (0, 0),
                        (0, Cmid_p - Cmid), (0, Cout_p - Cout)))
    w2m = w2t.reshape(9 * Cmid_p, Cout_p).astype(jnp.float32)

    s1p = jnp.pad(s1, (0, Cmid_p - Cmid)).reshape(1, Cmid_p).astype(jnp.float32)
    b1p = jnp.pad(b1, (0, Cmid_p - Cmid)).reshape(1, Cmid_p).astype(jnp.float32)
    s2p = jnp.pad(s2, (0, Cout_p - Cout)).reshape(1, Cout_p).astype(jnp.float32)
    b2p = jnp.pad(b2, (0, Cout_p - Cout)).reshape(1, Cout_p).astype(jnp.float32)

    out = pl.pallas_call(
        _down_fused_kernel,
        out_shape=jax.ShapeDtypeStruct((N, Hh, Wh, Cout_p), x_nchw.dtype),
        grid=(N,),
        in_specs=[
            pl.BlockSpec((1, Hh, 2, Wh, 2 * Cin), lambda n: (n, 0, 0, 0, 0)),
            pl.BlockSpec((9 * Cin, Cmid_p), lambda n: (0, 0)),
            pl.BlockSpec((1, Cmid_p), lambda n: (0, 0)),
            pl.BlockSpec((1, Cmid_p), lambda n: (0, 0)),
            pl.BlockSpec((9 * Cmid_p, Cout_p), lambda n: (0, 0)),
            pl.BlockSpec((1, Cout_p), lambda n: (0, 0)),
            pl.BlockSpec((1, Cout_p), lambda n: (0, 0)),
        ],
        out_specs=pl.BlockSpec((1, Hh, Wh, Cout_p), lambda n: (n, 0, 0, 0)),
        scratch_shapes=[
            pltpu.VMEM((Hh + 2, Wh + 2, Cin), jnp.float32),
            pltpu.VMEM((Hh + 2, Wh + 2, Cmid_p), jnp.float32),
        ],
        compiler_params=pltpu.CompilerParams(
            dimension_semantics=("parallel",)),
    )(x, w1m, s1p, b1p, w2m, s2p, b2p)

    out = out[..., :Cout]                          # drop channel padding
    return jnp.transpose(out, (0, 3, 1, 2))        # NHWC -> NCHW


# ---------------------------------------------------------------------------
# Pure-JAX reference (for correctness check)
# ---------------------------------------------------------------------------
def _ref_conv(x_nhwc, w_oihw):
    w_hwio = jnp.transpose(w_oihw, (2, 3, 1, 0))
    return lax.conv_general_dilated(
        x_nhwc, w_hwio, window_strides=(1, 1), padding="SAME",
        dimension_numbers=("NHWC", "HWIO", "NHWC"))


def down_reference(x_nchw, params):
    x = jnp.transpose(x_nchw, (0, 2, 3, 1))
    N, H, W, C = x.shape
    x = x.reshape(N, H // 2, 2, W // 2, 2, C).max(axis=(2, 4))
    x = jnp.maximum(_ref_conv(x, params["w1"]) * params["scale1"]
                    + params["bias1"], 0.0)
    x = jnp.maximum(_ref_conv(x, params["w2"]) * params["scale2"]
                    + params["bias2"], 0.0)
    return jnp.transpose(x, (0, 3, 1, 2))


# ---------------------------------------------------------------------------
def make_params(key, in_channels, out_channels):
    mid_channels = out_channels
    k1, k2 = jax.random.split(key)
    eps = 1e-5
    # Conv weights (no bias, as in the module). BN folded (eval-mode defaults).
    w1 = 0.1 * jax.random.normal(k1, (mid_channels, in_channels, 3, 3),
                                 jnp.float32)
    w2 = 0.1 * jax.random.normal(k2, (out_channels, mid_channels, 3, 3),
                                 jnp.float32)
    scale1 = jnp.full((mid_channels,), 1.0 / jnp.sqrt(1.0 + eps), jnp.float32)
    bias1 = jnp.zeros((mid_channels,), jnp.float32)
    scale2 = jnp.full((out_channels,), 1.0 / jnp.sqrt(1.0 + eps), jnp.float32)
    bias2 = jnp.zeros((out_channels,), jnp.float32)
    return dict(w1=w1, scale1=scale1, bias1=bias1,
                w2=w2, scale2=scale2, bias2=bias2)


if __name__ == "__main__":
    key = jax.random.PRNGKey(0)
    kx, kp = jax.random.split(key)

    N, Cin, H, W = 2, 4, 16, 16
    Cout = 8
    x = jax.random.normal(kx, (N, Cin, H, W), jnp.float32)
    params = make_params(kp, Cin, Cout)

    fwd = jax.jit(down_forward)
    out = jax.block_until_ready(fwd(x, params))
    ref = jax.block_until_ready(down_reference(x, params))

    assert out.shape == (N, Cout, H // 2, W // 2), out.shape
    assert jnp.allclose(out, ref, atol=1e-4, rtol=1e-4), (
        float(jnp.max(jnp.abs(out - ref))))
    print("KERNEL_OK")
</pallas_src>

<mosaic_0001>
module attributes {stable_mosaic.version = 11 : i64} {
  func.func @_down_fused_kernel(%arg0: i32, %arg1: memref<1x8x2x8x8xf32, #tpu.memory_space<vmem>>, %arg2: memref<36x128xf32, #tpu.memory_space<vmem>>, %arg3: memref<1x128xf32, #tpu.memory_space<vmem>>, %arg4: memref<1x128xf32, #tpu.memory_space<vmem>>, %arg5: memref<1152x128xf32, #tpu.memory_space<vmem>>, %arg6: memref<1x128xf32, #tpu.memory_space<vmem>>, %arg7: memref<1x128xf32, #tpu.memory_space<vmem>>, %arg8: memref<1x8x8x128xf32, #tpu.memory_space<vmem>>, %arg9: memref<10x10x4xf32, #tpu.memory_space<vmem>>, %arg10: memref<10x10x128xf32, #tpu.memory_space<vmem>>) attributes {dimension_semantics = [#tpu.dimension_semantics<parallel>], iteration_bounds = array<i64: 2>, scalar_prefetch = 0 : i64, scratch_operands = 2 : i64, tpu.core_type = #tpu.core_type<tc>, window_params = [{transform_indices = @transform_0, window_bounds = array<i64: 1, 8, 2, 8, 8>}, {pipeline_mode = #tpu.pipeline_mode<synchronous>, transform_indices = @transform_1, window_bounds = array<i64: 36, 128>}, {pipeline_mode = #tpu.pipeline_mode<synchronous>, transform_indices = @transform_2, window_bounds = array<i64: 1, 128>}, {pipeline_mode = #tpu.pipeline_mode<synchronous>, transform_indices = @transform_3, window_bounds = array<i64: 1, 128>}, {pipeline_mode = #tpu.pipeline_mode<synchronous>, transform_indices = @transform_4, window_bounds = array<i64: 1152, 128>}, {pipeline_mode = #tpu.pipeline_mode<synchronous>, transform_indices = @transform_5, window_bounds = array<i64: 1, 128>}, {pipeline_mode = #tpu.pipeline_mode<synchronous>, transform_indices = @transform_6, window_bounds = array<i64: 1, 128>}, {transform_indices = @transform_7, window_bounds = array<i64: 1, 8, 8, 128>}]} {
    %c0 = arith.constant 0 : index
    %c0_0 = arith.constant 0 : index
    %c0_1 = arith.constant 0 : index
    %c0_2 = arith.constant 0 : index
    %c0_3 = arith.constant 0 : index
    %0 = vector.load %arg1[%c0, %c0_0, %c0_1, %c0_2, %c0_3] : memref<1x8x2x8x8xf32, #tpu.memory_space<vmem>>, vector<1x8x2x8x8xf32>
    %1 = vector.shape_cast %0 : vector<1x8x2x8x8xf32> to vector<8x2x8x8xf32>
    %2 = vector.extract_strided_slice %1 {offsets = [0, 0, 0, 0], sizes = [8, 1, 8, 8], strides = [1, 1, 1, 1]} : vector<8x2x8x8xf32> to vector<8x1x8x8xf32>
    %3 = vector.shape_cast %2 : vector<8x1x8x8xf32> to vector<8x8x8xf32>
    %4 = vector.extract_strided_slice %1 {offsets = [0, 1, 0, 0], sizes = [8, 1, 8, 8], strides = [1, 1, 1, 1]} : vector<8x2x8x8xf32> to vector<8x1x8x8xf32>
    %5 = vector.shape_cast %4 : vector<8x1x8x8xf32> to vector<8x8x8xf32>
    %6 = arith.maximumf %3, %5 : vector<8x8x8xf32>
    %7 = vector.extract_strided_slice %6 {offsets = [0, 0, 0], sizes = [8, 8, 4], strides = [1, 1, 1]} : vector<8x8x8xf32> to vector<8x8x4xf32>
    %8 = vector.extract_strided_slice %6 {offsets = [0, 0, 4], sizes = [8, 8, 4], strides = [1, 1, 1]} : vector<8x8x8xf32> to vector<8x8x4xf32>
    %9 = arith.maximumf %7, %8 : vector<8x8x4xf32>
    %cst = arith.constant 0.000000e+00 : f32
    %10 = vector.broadcast %cst : f32 to vector<10x10x4xf32>
    %c0_4 = arith.constant 0 : index
    %c0_5 = arith.constant 0 : index
    %c0_6 = arith.constant 0 : index
    %11 = vector.load %arg9[%c0_4, %c0_5, %c0_6] : memref<10x10x4xf32, #tpu.memory_space<vmem>>, vector<10x10x4xf32>
    tpu.vector_store %arg9[%c0_4, %c0_5, %c0_6], %10 {strides = array<i32>} : memref<10x10x4xf32, #tpu.memory_space<vmem>>, vector<10x10x4xf32>,
    %c1 = arith.constant 1 : index
    %c1_7 = arith.constant 1 : index
    %c0_8 = arith.constant 0 : index
    %12 = vector.load %arg9[%c1, %c1_7, %c0_8] : memref<10x10x4xf32, #tpu.memory_space<vmem>>, vector<8x8x4xf32>
    tpu.vector_store %arg9[%c1, %c1_7, %c0_8], %9 {strides = array<i32>} : memref<10x10x4xf32, #tpu.memory_space<vmem>>, vector<8x8x4xf32>,
    %c0_9 = arith.constant 0 : index
    %c0_10 = arith.constant 0 : index
    %c0_11 = arith.constant 0 : index
    %13 = vector.load %arg9[%c0_9, %c0_10, %c0_11] : memref<10x10x4xf32, #tpu.memory_space<vmem>>, vector<8x8x4xf32>
    %14 = vector.shape_cast %13 : vector<8x8x4xf32> to vector<64x4xf32>
    %c0_12 = arith.constant 0 : index
    %c1_13 = arith.constant 1 : index
    %c0_14 = arith.constant 0 : index
    %15 = vector.load %arg9[%c0_12, %c1_13, %c0_14] : memref<10x10x4xf32, #tpu.memory_space<vmem>>, vector<8x8x4xf32>
    %16 = vector.shape_cast %15 : vector<8x8x4xf32> to vector<64x4xf32>
    %c0_15 = arith.constant 0 : index
    %c2 = arith.constant 2 : index
    %c0_16 = arith.constant 0 : index
    %17 = vector.load %arg9[%c0_15, %c2, %c0_16] : memref<10x10x4xf32, #tpu.memory_space<vmem>>, vector<8x8x4xf32>
    %18 = vector.shape_cast %17 : vector<8x8x4xf32> to vector<64x4xf32>
    %c1_17 = arith.constant 1 : index
    %c0_18 = arith.constant 0 : index
    %c0_19 = arith.constant 0 : index
    %19 = vector.load %arg9[%c1_17, %c0_18, %c0_19] : memref<10x10x4xf32, #tpu.memory_space<vmem>>, vector<8x8x4xf32>
    %20 = vector.shape_cast %19 : vector<8x8x4xf32> to vector<64x4xf32>
    %c1_20 = arith.constant 1 : index
    %c1_21 = arith.constant 1 : index
    %c0_22 = arith.constant 0 : index
    %21 = vector.load %arg9[%c1_20, %c1_21, %c0_22] : memref<10x10x4xf32, #tpu.memory_space<vmem>>, vector<8x8x4xf32>
    %22 = vector.shape_cast %21 : vector<8x8x4xf32> to vector<64x4xf32>
    %c1_23 = arith.constant 1 : index
    %c2_24 = arith.constant 2 : index
    %c0_25 = arith.constant 0 : index
    %23 = vector.load %arg9[%c1_23, %c2_24, %c0_25] : memref<10x10x4xf32, #tpu.memory_space<vmem>>, vector<8x8x4xf32>
    %24 = vector.shape_cast %23 : vector<8x8x4xf32> to vector<64x4xf32>
    %c2_26 = arith.constant 2 : index
    %c0_27 = arith.constant 0 : index
    %c0_28 = arith.constant 0 : index
    %25 = vector.load %arg9[%c2_26, %c0_27, %c0_28] : memref<10x10x4xf32, #tpu.memory_space<vmem>>, vector<8x8x4xf32>
    %26 = vector.shape_cast %25 : vector<8x8x4xf32> to vector<64x4xf32>
    %c2_29 = arith.constant 2 : index
    %c1_30 = arith.constant 1 : index
    %c0_31 = arith.constant 0 : index
    %27 = vector.load %arg9[%c2_29, %c1_30, %c0_31] : memref<10x10x4xf32, #tpu.memory_space<vmem>>, vector<8x8x4xf32>
    %28 = vector.shape_cast %27 : vector<8x8x4xf32> to vector<64x4xf32>
    %c2_32 = arith.constant 2 : index
    %c2_33 = arith.constant 2 : index
    %c0_34 = arith.constant 0 : index
    %29 = vector.load %arg9[%c2_32, %c2_33, %c0_34] : memref<10x10x4xf32, #tpu.memory_space<vmem>>, vector<8x8x4xf32>
    %30 = vector.shape_cast %29 : vector<8x8x4xf32> to vector<64x4xf32>
    %31 = tpu.concatenate %14, %16, %18, %20, %22, %24, %26, %28, %30 in 1 : vector<64x4xf32>, vector<64x4xf32>, vector<64x4xf32>, vector<64x4xf32>, vector<64x4xf32>, vector<64x4xf32>, vector<64x4xf32>, vector<64x4xf32>, vector<64x4xf32> -> vector<64x36xf32>
    %c0_35 = arith.constant 0 : index
    %c0_36 = arith.constant 0 : index
    %32 = vector.load %arg2[%c0_35, %c0_36] : memref<36x128xf32, #tpu.memory_space<vmem>>, vector<36x128xf32>
    %cst_37 = arith.constant dense<0.000000e+00> : vector<64x128xf32>
    %33 = tpu.matmul %31, %32, %cst_37 {dimension_numbers = #tpu.dot_dimension_numbers<[1], [0], [0], [1], [0, 0, 1, 1], [], []>} : vector<64x36xf32>, vector<36x128xf32>, vector<64x128xf32> -> vector<64x128xf32>
    %c0_38 = arith.constant 0 : index
    %c0_39 = arith.constant 0 : index
    %34 = vector.load %arg3[%c0_38, %c0_39] : memref<1x128xf32, #tpu.memory_space<vmem>>, vector<1x128xf32>
    %35 = vector.broadcast %34 : vector<1x128xf32> to vector<64x128xf32>
    %36 = arith.mulf %33, %35 : vector<64x128xf32>
    %c0_40 = arith.constant 0 : index
    %c0_41 = arith.constant 0 : index
    %37 = vector.load %arg4[%c0_40, %c0_41] : memref<1x128xf32, #tpu.memory_space<vmem>>, vector<1x128xf32>
    %38 = vector.broadcast %37 : vector<1x128xf32> to vector<64x128xf32>
    %39 = arith.addf %36, %38 : vector<64x128xf32>
    %cst_42 = arith.constant 0.000000e+00 : f32
    %40 = vector.broadcast %cst_42 : f32 to vector<64x128xf32>
    %41 = arith.maximumf %39, %40 : vector<64x128xf32>
    %cst_43 = arith.constant 0.000000e+00 : f32
    %42 = vector.broadcast %cst_43 : f32 to vector<10x10x128xf32>
    %c0_44 = arith.constant 0 : index
    %c0_45 = arith.constant 0 : index
    %c0_46 = arith.constant 0 : index
    %43 = vector.load %arg10[%c0_44, %c0_45, %c0_46] : memref<10x10x128xf32, #tpu.memory_space<vmem>>, vector<10x10x128xf32>
    tpu.vector_store %arg10[%c0_44, %c0_45, %c0_46], %42 {strides = array<i32>} : memref<10x10x128xf32, #tpu.memory_space<vmem>>, vector<10x10x128xf32>,
    %44 = vector.shape_cast %41 : vector<64x128xf32> to vector<8x8x128xf32>
    %c1_47 = arith.constant 1 : index
    %c1_48 = arith.constant 1 : index
    %c0_49 = arith.constant 0 : index
    %45 = vector.load %arg10[%c1_47, %c1_48, %c0_49] : memref<10x10x128xf32, #tpu.memory_space<vmem>>, vector<8x8x128xf32>
    tpu.vector_store %arg10[%c1_47, %c1_48, %c0_49], %44 {strides = array<i32>} : memref<10x10x128xf32, #tpu.memory_space<vmem>>, vector<8x8x128xf32>,
    %c0_50 = arith.constant 0 : index
    %c0_51 = arith.constant 0 : index
    %c0_52 = arith.constant 0 : index
    %46 = vector.load %arg10[%c0_50, %c0_51, %c0_52] : memref<10x10x128xf32, #tpu.memory_space<vmem>>, vector<8x8x128xf32>
    %47 = vector.shape_cast %46 : vector<8x8x128xf32> to vector<64x128xf32>
    %c0_53 = arith.constant 0 : index
    %c1_54 = arith.constant 1 : index
    %c0_55 = arith.constant 0 : index
    %48 = vector.load %arg10[%c0_53, %c1_54, %c0_55] : memref<10x10x128xf32, #tpu.memory_space<vmem>>, vector<8x8x128xf32>
    %49 = vector.shape_cast %48 : vector<8x8x128xf32> to vector<64x128xf32>
    %c0_56 = arith.constant 0 : index
    %c2_57 = arith.constant 2 : index
    %c0_58 = arith.constant 0 : index
    %50 = vector.load %arg10[%c0_56, %c2_57, %c0_58] : memref<10x10x128xf32, #tpu.memory_space<vmem>>, vector<8x8x128xf32>
    %51 = vector.shape_cast %50 : vector<8x8x128xf32> to vector<64x128xf32>
    %c1_59 = arith.constant 1 : index
    %c0_60 = arith.constant 0 : index
    %c0_61 = arith.constant 0 : index
    %52 = vector.load %arg10[%c1_59, %c0_60, %c0_61] : memref<10x10x128xf32, #tpu.memory_space<vmem>>, vector<8x8x128xf32>
    %53 = vector.shape_cast %52 : vector<8x8x128xf32> to vector<64x128xf32>
    %c1_62 = arith.constant 1 : index
    %c1_63 = arith.constant 1 : index
    %c0_64 = arith.constant 0 : index
    %54 = vector.load %arg10[%c1_62, %c1_63, %c0_64] : memref<10x10x128xf32, #tpu.memory_space<vmem>>, vector<8x8x128xf32>
    %55 = vector.shape_cast %54 : vector<8x8x128xf32> to vector<64x128xf32>
    %c1_65 = arith.constant 1 : index
    %c2_66 = arith.constant 2 : index
    %c0_67 = arith.constant 0 : index
    %56 = vector.load %arg10[%c1_65, %c2_66, %c0_67] : memref<10x10x128xf32, #tpu.memory_space<vmem>>, vector<8x8x128xf32>
    %57 = vector.shape_cast %56 : vector<8x8x128xf32> to vector<64x128xf32>
    %c2_68 = arith.constant 2 : index
    %c0_69 = arith.constant 0 : index
    %c0_70 = arith.constant 0 : index
    %58 = vector.load %arg10[%c2_68, %c0_69, %c0_70] : memref<10x10x128xf32, #tpu.memory_space<vmem>>, vector<8x8x128xf32>
    %59 = vector.shape_cast %58 : vector<8x8x128xf32> to vector<64x128xf32>
    %c2_71 = arith.constant 2 : index
    %c1_72 = arith.constant 1 : index
    %c0_73 = arith.constant 0 : index
    %60 = vector.load %arg10[%c2_71, %c1_72, %c0_73] : memref<10x10x128xf32, #tpu.memory_space<vmem>>, vector<8x8x128xf32>
    %61 = vector.shape_cast %60 : vector<8x8x128xf32> to vector<64x128xf32>
    %c2_74 = arith.constant 2 : index
    %c2_75 = arith.constant 2 : index
    %c0_76 = arith.constant 0 : index
    %62 = vector.load %arg10[%c2_74, %c2_75, %c0_76] : memref<10x10x128xf32, #tpu.memory_space<vmem>>, vector<8x8x128xf32>
    %63 = vector.shape_cast %62 : vector<8x8x128xf32> to vector<64x128xf32>
    %64 = tpu.concatenate %47, %49, %51, %53, %55, %57, %59, %61, %63 in 1 : vector<64x128xf32>, vector<64x128xf32>, vector<64x128xf32>, vector<64x128xf32>, vector<64x128xf32>, vector<64x128xf32>, vector<64x128xf32>, vector<64x128xf32>, vector<64x128xf32> -> vector<64x1152xf32>
    %c0_77 = arith.constant 0 : index
    %c0_78 = arith.constant 0 : index
    %65 = vector.load %arg5[%c0_77, %c0_78] : memref<1152x128xf32, #tpu.memory_space<vmem>>, vector<1152x128xf32>
    %cst_79 = arith.constant dense<0.000000e+00> : vector<64x128xf32>
    %66 = tpu.matmul %64, %65, %cst_79 {dimension_numbers = #tpu.dot_dimension_numbers<[1], [0], [0], [1], [0, 0, 1, 1], [], []>} : vector<64x1152xf32>, vector<1152x128xf32>, vector<64x128xf32> -> vector<64x128xf32>
    %c0_80 = arith.constant 0 : index
    %c0_81 = arith.constant 0 : index
    %67 = vector.load %arg6[%c0_80, %c0_81] : memref<1x128xf32, #tpu.memory_space<vmem>>, vector<1x128xf32>
    %68 = vector.broadcast %67 : vector<1x128xf32> to vector<64x128xf32>
    %69 = arith.mulf %66, %68 : vector<64x128xf32>
    %c0_82 = arith.constant 0 : index
    %c0_83 = arith.constant 0 : index
    %70 = vector.load %arg7[%c0_82, %c0_83] : memref<1x128xf32, #tpu.memory_space<vmem>>, vector<1x128xf32>
    %71 = vector.broadcast %70 : vector<1x128xf32> to vector<64x128xf32>
    %72 = arith.addf %69, %71 : vector<64x128xf32>
    %cst_84 = arith.constant 0.000000e+00 : f32
    %73 = vector.broadcast %cst_84 : f32 to vector<64x128xf32>
    %74 = arith.maximumf %72, %73 : vector<64x128xf32>
    %75 = vector.shape_cast %74 : vector<64x128xf32> to vector<8x8x128xf32>
    %c0_85 = arith.constant 0 : index
    %c0_86 = arith.constant 0 : index
    %c0_87 = arith.constant 0 : index
    %c0_88 = arith.constant 0 : index
    %76 = vector.load %arg8[%c0_85, %c0_86, %c0_87, %c0_88] : memref<1x8x8x128xf32, #tpu.memory_space<vmem>>, vector<1x8x8x128xf32>
    %77 = vector.shape_cast %76 : vector<1x8x8x128xf32> to vector<8x8x128xf32>
    %78 = vector.shape_cast %75 : vector<8x8x128xf32> to vector<1x8x8x128xf32>
    tpu.vector_store %arg8[%c0_85, %c0_86, %c0_87, %c0_88], %78 {strides = array<i32>} : memref<1x8x8x128xf32, #tpu.memory_space<vmem>>, vector<1x8x8x128xf32>,
    return
  }
  func.func @transform_0(%arg0: i32) -> (i32, i32, i32, i32, i32) {
    %c0_i32 = arith.constant 0 : i32
    %c0_i32_0 = arith.constant 0 : i32
    %c0_i32_1 = arith.constant 0 : i32
    %c0_i32_2 = arith.constant 0 : i32
    %c0_i32_3 = arith.constant 0 : i32
    return %arg0, %c0_i32, %c0_i32_0, %c0_i32_1, %c0_i32_2 : i32, i32, i32, i32, i32
  }
  func.func @transform_1(%arg0: i32) -> (i32, i32) {
    %c0_i32 = arith.constant 0 : i32
    %c0_i32_0 = arith.constant 0 : i32
    %c0_i32_1 = arith.constant 0 : i32
    return %c0_i32, %c0_i32_0 : i32, i32
  }
  func.func @transform_2(%arg0: i32) -> (i32, i32) {
    %c0_i32 = arith.constant 0 : i32
    %c0_i32_0 = arith.constant 0 : i32
    %c0_i32_1 = arith.constant 0 : i32
    return %c0_i32, %c0_i32_0 : i32, i32
  }
  func.func @transform_3(%arg0: i32) -> (i32, i32) {
    %c0_i32 = arith.constant 0 : i32
    %c0_i32_0 = arith.constant 0 : i32
    %c0_i32_1 = arith.constant 0 : i32
    return %c0_i32, %c0_i32_0 : i32, i32
  }
  func.func @transform_4(%arg0: i32) -> (i32, i32) {
    %c0_i32 = arith.constant 0 : i32
    %c0_i32_0 = arith.constant 0 : i32
    %c0_i32_1 = arith.constant 0 : i32
    return %c0_i32, %c0_i32_0 : i32, i32
  }
  func.func @transform_5(%arg0: i32) -> (i32, i32) {
    %c0_i32 = arith.constant 0 : i32
    %c0_i32_0 = arith.constant 0 : i32
    %c0_i32_1 = arith.constant 0 : i32
    return %c0_i32, %c0_i32_0 : i32, i32
  }
  func.func @transform_6(%arg0: i32) -> (i32, i32) {
    %c0_i32 = arith.constant 0 : i32
    %c0_i32_0 = arith.constant 0 : i32
    %c0_i32_1 = arith.constant 0 : i32
    return %c0_i32, %c0_i32_0 : i32, i32
  }
  func.func @transform_7(%arg0: i32) -> (i32, i32, i32, i32) {
    %c0_i32 = arith.constant 0 : i32
    %c0_i32_0 = arith.constant 0 : i32
    %c0_i32_1 = arith.constant 0 : i32
    %c0_i32_2 = arith.constant 0 : i32
    return %arg0, %c0_i32, %c0_i32_0, %c0_i32_1 : i32, i32, i32, i32
  }
}

</mosaic_0001>

<bundles_post_ra>
// kernel: down_forward.1
= control target key start
LH: loop header
LB: loop body
LE: loop exit
PB: predicated region body
PF: predicated region fallthrough
CT: control target
= control target key end

     0   :  { %s2421_s24 = smov 0   ;;  %s3310_s0 = inlined_call_operand.vmem [shape: f32[2,8,2,8,8], index: 0, kind: input, shape index: {}]   ;;  %s3311_s1 = inlined_call_operand.vmem [shape: f32[36,128], index: 1, kind: input, shape index: {}]   ;;  %s3312_s2 = inlined_call_operand.vmem [shape: f32[1,128], index: 2, kind: input, shape index: {}]   ;;  %s3313_s3 = inlined_call_operand.vmem [shape: f32[1,128], index: 3, kind: input, shape index: {}]   ;;  %s3314_s4 = inlined_call_operand.vmem [shape: f32[1152,128], index: 4, kind: input, shape index: {}]   ;;  %s3315_s5 = inlined_call_operand.vmem [shape: f32[1,128], index: 5, kind: input, shape index: {}]   ;;  %s3316_s6 = inlined_call_operand.vmem [shape: f32[1,128], index: 6, kind: input, shape index: {}]   ;;  %s3317_s7 = inlined_call_operand.vmem [shape: f32[2,8,8,128], index: 7, kind: output, shape index: {}]  }
   0x1 LB: > { %s1823_s25 = sadd.s32 4294967295, %s2369_s24   ;;  %p1827_p0 = scmp.ge.s32.totalorder %s2369_s24, 1  ;;  %s2369_s24 = sphi %s2421_s24, %s17_s24  }
   0x2   : > { %p237_p1 = scmp.lt.s32.totalorder %s2369_s24, 3 }
   0x4   : > { %p238_p2 = pnand %p1827_p0, %p237_p1 }
   0x5   : > { %p2431_p3 = scmp.lt.s32.totalorder (!%p238_p2), %s1823_s25, 1  ;;  %vm343_vm0 = vcmask (!%p238_p2), 31744   ;;  %vm345_vm1 = vcmask (!%p238_p2), 25600   ;;  %v2371_v0 = vmov (!%p238_p2), 0.0   ;;  %s2372_s8 = smov (!%p238_p2), 124   ;;  %v774_v43 = vld [vmem:[%s3311_s1] sm:$0xff] (!%p238_p2) }
   0x6   : > { %241 = sbr.rel (%p238_p2) target bundleno = 878 (0x36e), region = 48  ;;  %347 = vst.msk [vmem:[#allocation2 + $0x10] sm:$0xff] (!%p238_p2), %vm343_vm0, %v2371_v0  ;;  %344 = vst.msk [vmem:[#allocation2] sm:$0xff] (!%p238_p2), %vm343_vm0, %v2371_v0  ;;  %s2373_s9 = smov (!%p238_p2), 4   ;;  %v775_v44 = vld [vmem:[%s3311_s1 + $0x8] sm:$0xff] (!%p238_p2)  ;;  %v776_v51 = vld [vmem:[%s3311_s1 + $0x10] sm:$0xff] (!%p238_p2) }
   0x7   : > { %348 = vst.msk [vmem:[#allocation2 + $0x18] sm:$0x3] (!%p238_p2), %vm345_vm1, %v2371_v0  ;;  %346 = vst.msk [vmem:[#allocation2 + $0x8] sm:$0x3] (!%p238_p2), %vm345_vm1, %v2371_v0  ;;  %s2374_s10 = smov (!%p238_p2), 24   ;;  %s2375_s11 = smov (!%p238_p2), 8   ;;  %v2176_v47 = vpack.c.bf16 (!%p238_p2), %v775_v44, %v774_v43 }
   0x8   : > { %349 = vst.msk [vmem:[#allocation2 + $0x20] sm:$0xff] (!%p238_p2), %vm343_vm0, %v2371_v0  ;;  %351 = vst.msk [vmem:[#allocation2 + $0x30] sm:$0xff] (!%p238_p2), %vm343_vm0, %v2371_v0  ;;  %s2376_s12 = smov (!%p238_p2), 12   ;;  %s2377_s17 = smov (!%p238_p2), 16   ;;  %v777_v52 = vld [vmem:[%s3311_s1 + $0x18] sm:$0xff] (!%p238_p2)  ;;  %vm804_vm2 = vcmask (!%p238_p2), 1043456  }
   0x9   : > { %350 = vst.msk [vmem:[#allocation2 + $0x28] sm:$0x3] (!%p238_p2), %vm345_vm1, %v2371_v0  ;;  %352 = vst.msk [vmem:[#allocation2 + $0x38] sm:$0x3] (!%p238_p2), %vm345_vm1, %v2371_v0  ;;  %2177 = vmatprep.subr.bf16.mxu0 (!%p238_p2), %v2176_v47  ;;  %v2180_v53 = vpack.c.bf16 (!%p238_p2), %v777_v52, %v776_v51  ;;  %s2378_s22 = smov (!%p238_p2), 20   ;;  %s2380_s28 = smov (!%p238_p2), 32  }
   0xa   : > { %353 = vst.msk [vmem:[#allocation2 + $0x40] sm:$0xff] (!%p238_p2), %vm343_vm0, %v2371_v0  ;;  %355 = vst.msk [vmem:[#allocation2 + $0x50] sm:$0xff] (!%p238_p2), %vm343_vm0, %v2371_v0  ;;  %2179 = vmatpush3.bf16.msra.mxu0 (!%p238_p2), %v2176_v47  ;;  %v778_v54 = vld [vmem:[%s3311_s1 + $0x20] sm:$0xf] (!%p238_p2)  ;;  %v1060_v47 = vld [vmem:[%s3314_s4 + $0x38] sm:$0xff] (!%p238_p2)  ;;  %vm711_vm3 = vcmask (!%p238_p2), 64512  }
   0xb   : > { %354 = vst.msk [vmem:[#allocation2 + $0x48] sm:$0x3] (!%p238_p2), %vm345_vm1, %v2371_v0  ;;  %356 = vst.msk [vmem:[#allocation2 + $0x58] sm:$0x3] (!%p238_p2), %vm345_vm1, %v2371_v0  ;;  %2181 = vmatprep.subr.bf16.mxu0 (!%p238_p2), %v2180_v53  ;;  %vm720_vm4 = vcmask (!%p238_p2), 97280   ;;  %vm729_vm5 = vcmask (!%p238_p2), 130048  }
   0xc   : > { %357 = vst.msk [vmem:[#allocation2 + $0x60] sm:$0xff] (!%p238_p2), %vm343_vm0, %v2371_v0  ;;  %359 = vst.msk [vmem:[#allocation2 + $0x70] sm:$0xff] (!%p238_p2), %vm343_vm0, %v2371_v0  ;;  %vm738_vm6 = vcmask (!%p238_p2), 162816   ;;  %vm747_vm7 = vcmask (!%p238_p2), 195584   ;;  %vm756_vm8 = vcmask (!%p238_p2), 228352   ;;  %vm765_vm9 = vcmask (!%p238_p2), 261120  }
   0xd   : > { %358 = vst.msk [vmem:[#allocation2 + $0x68] sm:$0x3] %vm345_vm1, %v2371_v0  ;;  %360 = vst.msk [vmem:[#allocation2 + $0x78] sm:$0x3] %vm345_vm1, %v2371_v0  ;;  %s3320_s25 = smov (!%p2431_p3, %s1823_s25), 1  ;;  %vm779_vm10 = vcmask 293888  }
   0xe   : > { %361 = vst.msk [vmem:[#allocation2 + $0x80] sm:$0xff] %vm343_vm0, %v2371_v0  ;;  %363 = vst.msk [vmem:[#allocation2 + $0x90] sm:$0xff] %vm343_vm0, %v2371_v0  ;;  %s1847_s27 = sshll.u32 %s3320_s25, 7  ;;  %v382_v25 = vld [vmem:[#allocation2 + $0x1] sm:$0xff]  ;;  %2183 = vmatpush3.bf16.msra.mxu0 %v2180_v53 }
   0xf   : > { %362 = vst.msk [vmem:[#allocation2 + $0x88] sm:$0x3] %vm345_vm1, %v2371_v0  ;;  %364 = vst.msk [vmem:[#allocation2 + $0x98] sm:$0x3] %vm345_vm1, %v2371_v0  ;;  %s273_s30 = scalar_lea.vmem %s3310_s0, %s1847_s27  ;;  %v390_v27 = vld [vmem:[#allocation2 + $0x2] sm:$0xff]  ;;  %2118 = vmatprep.subr.msk.mxu0 %vm804_vm2, %v778_v54  ;;  %s2379_s27 = smov 28  }
  0x10   : > { %951 = vst [vmem:[#allocation3] sm:$0xff] %v2371_v0  ;;  %952 = vst [vmem:[#allocation3 + $0x8] sm:$0x3] %v2371_v0  ;;  %v279_v1 = vld [vmem:[%s273_s30] sm:$0xff]  ;;  %v280_v2 = vld [vmem:[%s273_s30 + $0x8] sm:$0xff] }
  0x11   : > { %953 = vst [vmem:[#allocation3 + $0x10] sm:$0xff] %v2371_v0  ;;  %954 = vst [vmem:[#allocation3 + $0x18] sm:$0x3] %v2371_v0  ;;  %v281_v3 = vld [vmem:[%s273_s30 + $0x10] sm:$0xff]  ;;  %v295_v4 = vmax.f32 %v279_v1, %v280_v2  ;;  %v282_v5 = vld [vmem:[%s273_s30 + $0x18] sm:$0xff] }
  0x12   : > { %955 = vst [vmem:[#allocation3 + $0x20] sm:$0xff] %v2371_v0  ;;  %956 = vst [vmem:[#allocation3 + $0x28] sm:$0x3] %v2371_v0  ;;  %v283_v6 = vld [vmem:[%s273_s30 + $0x20] sm:$0xff]  ;;  %v284_v7 = vld [vmem:[%s273_s30 + $0x28] sm:$0xff]  ;;  %v296_v11 = vmax.f32 %v281_v3, %v282_v5  ;;  %2119 = vmatpush3.msk.msra.mxu0 %vm804_vm2, %v778_v54 }
  0x13   : > { %957 = vst [vmem:[#allocation3 + $0x30] sm:$0xff] %v2371_v0  ;;  %958 = vst [vmem:[#allocation3 + $0x38] sm:$0x3] %v2371_v0  ;;  %v297_v8 = vmax.f32 %v283_v6, %v284_v7  ;;  %v285_v9 = vld [vmem:[%s273_s30 + $0x30] sm:$0xff]  ;;  %v286_v10 = vld [vmem:[%s273_s30 + $0x38] sm:$0xff]  ;;  %311 = vrot.lane.b32.xlu0 %v295_v4, %s2372_s8 }
  0x14   : > { %959 = vst [vmem:[#allocation3 + $0x40] sm:$0xff] %v2371_v0  ;;  %960 = vst [vmem:[#allocation3 + $0x48] sm:$0x3] %v2371_v0  ;;  %v298_v12 = vmax.f32 %v285_v9, %v286_v10  ;;  %v287_v13 = vld [vmem:[%s273_s30 + $0x40] sm:$0xff]  ;;  %v288_v14 = vld [vmem:[%s273_s30 + $0x48] sm:$0xff] }
  0x15   : > { %961 = vst [vmem:[#allocation3 + $0x50] sm:$0xff] %v2371_v0  ;;  %962 = vst [vmem:[#allocation3 + $0x58] sm:$0x3] %v2371_v0  ;;  %315 = vrot.lane.b32.xlu1 %v297_v8, %s2372_s8  ;;  %v289_v15 = vld [vmem:[%s273_s30 + $0x50] sm:$0xff]  ;;  %v290_v16 = vld [vmem:[%s273_s30 + $0x58] sm:$0xff]  ;;  %v299_v17 = vmax.f32 %v287_v13, %v288_v14 }
  0x16   : > { %963 = vst [vmem:[#allocation3 + $0x60] sm:$0xff] %v2371_v0  ;;  %964 = vst [vmem:[#allocation3 + $0x68] sm:$0x3] %v2371_v0  ;;  %v300_v18 = vmax.f32 %v289_v15, %v290_v16  ;;  %v291_v19 = vld [vmem:[%s273_s30 + $0x60] sm:$0xff]  ;;  %v292_v20 = vld [vmem:[%s273_s30 + $0x68] sm:$0xff] }
  0x17   : > { %965 = vst [vmem:[#allocation3 + $0x70] sm:$0xff] %v2371_v0  ;;  %966 = vst [vmem:[#allocation3 + $0x78] sm:$0x3] %v2371_v0  ;;  %313 = vrot.lane.b32.xlu0 %v296_v11, %s2372_s8  ;;  %v293_v21 = vld [vmem:[%s273_s30 + $0x70] sm:$0xff]  ;;  %v294_v22 = vld [vmem:[%s273_s30 + $0x78] sm:$0xff]  ;;  %v301_v23 = vmax.f32 %v291_v19, %v292_v20 }
  0x18   : > { %967 = vst [vmem:[#allocation3 + $0x80] sm:$0xff] %v2371_v0  ;;  %968 = vst [vmem:[#allocation3 + $0x88] sm:$0x3] %v2371_v0  ;;  %v302_v24 = vmax.f32 %v293_v21, %v294_v22  ;;  %v430_v26 = vld [vmem:[#allocation2 + $0x90] sm:$0xff]  ;;  %v1069_v14 = vld [vmem:[%s3314_s4 + $0x80] sm:$0xff] }
  0x19   : > { %969 = vst [vmem:[#allocation3 + $0x90] sm:$0xff] %v2371_v0  ;;  %970 = vst [vmem:[#allocation3 + $0x98] sm:$0x3] %v2371_v0  ;;  %317 = vrot.lane.b32.xlu1 %v298_v12, %s2372_s8  ;;  %v1070_v15 = vld [vmem:[%s3314_s4 + $0x88] sm:$0xff]  ;;  %v1071_v19 = vld [vmem:[%s3314_s4 + $0x90] sm:$0xff] }
  0x1a   : > { %v2184_v16 = vpack.c.bf16 %v1070_v15, %v1069_v14  ;;  %v1072_v21 = vld [vmem:[%s3314_s4 + $0x98] sm:$0xff]  ;;  %v1101_v22 = vld [vmem:[%s3314_s4 + $0x180] sm:$0xff] }
  0x1b   : > { %319 = vrot.lane.b32.xlu0 %v299_v17, %s2372_s8 }
  0x1c   : > { %2185 = vmatprep.subr.bf16.mxu1 %v2184_v16 }
  0x1d   : > { %321 = vrot.lane.b32.xlu1 %v300_v18, %s2372_s8 }
  0x1f   : > { %323 = vrot.lane.b32.xlu0 %v301_v23, %s2372_s8 }
  0x21   : > { %325 = vrot.lane.b32.xlu1 %v302_v24, %s2372_s8 }
  0x23   : > { %455 = vrot.lane.b32.xlu0 %v382_v25, %s2373_s9  ;;  %v2188_v25 = vpack.c.bf16 %v1072_v21, %v1071_v19  ;;  %v1085_v19 = vld [vmem:[%s3314_s4 + $0x100] sm:$0xff]  ;;  %v1103_v21 = vld [vmem:[%s3314_s4 + $0x190] sm:$0xff] }
  0x25   : > { %629 = vrot.lane.b32.xlu1 %v430_v26, %s2374_s10 }
  0x27   : > { %487 = vrot.lane.b32.xlu0 %v390_v27, %s2375_s11  ;;  %v1055_v27 = vld [vmem:[%s3314_s4 + $0x10] sm:$0xff] }
  0x85   : > { %v312_v28 = vpop.permute.xlu0 %311 }
  0x86   : > { %v335_v29 = vmax.f32 %v295_v4, %v312_v28  ;;  %v1056_v28 = vld [vmem:[%s3314_s4 + $0x18] sm:$0xff] }
  0x87   : > { %v316_v30 = vpop.permute.xlu1 %315 }
  0x88   : > { %v337_v31 = vmax.f32 %v297_v8, %v316_v30  ;;  %366 = vst.msk [vmem:[#allocation2 + $0x11] sm:$0xff] %vm343_vm0, %v335_v29  ;;  %v1073_v29 = vld [vmem:[%s3314_s4 + $0xa0] sm:$0xff]  ;;  %v438_v30 = vld [vmem:[#allocation2 + $0x91] sm:$0xff] }
  0x89   : > { %v314_v32 = vpop.permute.xlu0 %313 }
  0x8a   : > { %368 = vst.msk [vmem:[#allocation2 + $0x31] sm:$0xff] %vm343_vm0, %v337_v31  ;;  %v336_v33 = vmax.f32 %v296_v11, %v314_v32  ;;  %v2190_v31 = vpack.c.bf16 %v1056_v28, %v1055_v27  ;;  %v1074_v32 = vld [vmem:[%s3314_s4 + $0xa8] sm:$0xff] }
  0x8b   : > { %v318_v34 = vpop.permute.xlu1 %317 }
  0x8c   : > { %v338_v35 = vmax.f32 %v298_v12, %v318_v34  ;;  %367 = vst.msk [vmem:[#allocation2 + $0x21] sm:$0xff] %vm343_vm0, %v336_v33 }
  0x8d   : > { %v320_v36 = vpop.permute.xlu0 %319 }
  0x8e   : > { %369 = vst.msk [vmem:[#allocation2 + $0x41] sm:$0xff] %vm343_vm0, %v338_v35  ;;  %v339_v37 = vmax.f32 %v299_v17, %v320_v36  ;;  %v1053_v17 = vld [vmem:[%s3314_s4] sm:$0xff]  ;;  %v2192_v35 = vpack.c.bf16 %v1074_v32, %v1073_v29 }
  0x8f   : > { %v322_v38 = vpop.permute.xlu1 %321  ;;  %v2512_v39 = vld [vmem:[#allocation2 + $0x10] sm:$0xff]  ;;  %v1057_v36 = vld [vmem:[%s3314_s4 + $0x20] sm:$0xff] }
  0x90   : > { %v383_v40 = vld [vmem:[#allocation2 + $0x11] sm:$0xff]  ;;  %v340_v41 = vmax.f32 %v300_v18, %v322_v38  ;;  %519 = vrot.lane.b32.xlu0 %v2512_v39, %s2376_s12  ;;  %370 = vst.msk [vmem:[#allocation2 + $0x51] sm:$0xff] %vm343_vm0, %v339_v37  ;;  %v1054_v18 = vld [vmem:[%s3314_s4 + $0x8] sm:$0xff] }
  0x91   : > { %457 = vrot.lane.b32.xlu1 %v383_v40, %s2373_s9  ;;  %v324_v42 = vpop.permute.xlu0 %323  ;;  %v391_v48 = vld [vmem:[#allocation2 + $0x12] sm:$0xff]  ;;  %v2186_v20 = vpack.c.bf16 %v1054_v18, %v1053_v17  ;;  %v1058_v37 = vld [vmem:[%s3314_s4 + $0x28] sm:$0xff] }
  0x92   : > { %371 = vst.msk [vmem:[#allocation2 + $0x61] sm:$0xff] %vm343_vm0, %v340_v41  ;;  %v341_v45 = vmax.f32 %v301_v23, %v324_v42  ;;  %v2548_v57 = vld [vmem:[#allocation2 + $0x30] sm:$0xff]  ;;  %v1102_v23 = vld [vmem:[%s3314_s4 + $0x188] sm:$0xff]  ;;  %v2194_v42 = vpack.c.bf16 %v1058_v37, %v1057_v36 }
  0x93   : > { %v326_v46 = vpop.permute.xlu1 %325  ;;  %v2528_v50 = vld [vmem:[#allocation2 + $0x20] sm:$0xff]  ;;  %v440_v58 = vld [vmem:[#allocation2 + $0x32] sm:$0xff]  ;;  %v2216_v26 = vpack.c.bf16 %v1102_v23, %v1101_v22  ;;  %2187 = vmatpush3.bf16.msra.mxu1 %v2186_v20 }
  0x94   : > { %v342_v49 = vmax.f32 %v302_v24, %v326_v46  ;;  %551 = vrot.lane.b32.xlu0 %v383_v40, %s2377_s17  ;;  %372 = vst.msk [vmem:[#allocation2 + $0x71] sm:$0xff] %vm343_vm0, %v341_v45  ;;  %v407_v55 = vld [vmem:[#allocation2 + $0x21] sm:$0xff]  ;;  %v432_v59 = vld [vmem:[#allocation2 + $0x31] sm:$0xff]  ;;  %2189 = vmatprep.subr.bf16.mxu1 %v2188_v25 }
  0x95   : > { %489 = vrot.lane.b32.xlu1 %v391_v48, %s2375_s11  ;;  %v415_v56 = vld [vmem:[#allocation2 + $0x22] sm:$0xff]  ;;  %v2610_v10 = vpop.permute.xlu0 %455  ;;  %2217 = vmatprep.subr.bf16.mxu0 %v2216_v26  ;;  %v1075_v38 = vld [vmem:[%s3314_s4 + $0xb0] sm:$0xff]  ;;  %v1076_v40 = vld [vmem:[%s3314_s4 + $0xb8] sm:$0xff] }
  0x96   : > { %373 = vst.msk [vmem:[#allocation2 + $0x81] sm:$0xff] %vm343_vm0, %v342_v49  ;;  %v2562_v60 = vld [vmem:[#allocation2 + $0x40] sm:$0xff]  ;;  %v446_v41 = vld [vmem:[#allocation2 + $0x92] sm:$0xff]  ;;  %v2196_v45 = vpack.c.bf16 %v1076_v40, %v1075_v38  ;;  %v1078_v49 = vld [vmem:[%s3314_s4 + $0xc8] sm:$0xff] }
  0x97   : > { %v409_v61 = vld [vmem:[#allocation2 + $0x41] sm:$0xff]  ;;  %v2572_v63 = vld [vmem:[#allocation2 + $0x50] sm:$0xff]  ;;  %v2616_v12 = vpop.permute.xlu1 %629  ;;  %2191 = vmatpush3.bf16.msra.mxu1 %v2190_v31  ;;  %v1104_v22 = vld [vmem:[%s3314_s4 + $0x198] sm:$0xff] }
  0x98   : > { %583 = vrot.lane.b32.xlu0 %v391_v48, %s2378_s22  ;;  %v417_v62 = vld [vmem:[#allocation2 + $0x42] sm:$0xff]  ;;  %v442_v1 = vld [vmem:[#allocation2 + $0x52] sm:$0xff]  ;;  %2193 = vmatprep.subr.bf16.mxu1 %v2192_v35  ;;  %v2220_v29 = vpack.c.bf16 %v1104_v22, %v1103_v21 }
  0x99   : > { %521 = vrot.lane.b32.xlu1 %v2528_v50, %s2376_s12  ;;  %v434_v2 = vld [vmem:[#allocation2 + $0x51] sm:$0xff]  ;;  %v2586_v3 = vld [vmem:[#allocation2 + $0x60] sm:$0xff]  ;;  %v2618_v13 = vpop.permute.xlu0 %487 }
  0x9a   : > { %v411_v4 = vld [vmem:[#allocation2 + $0x61] sm:$0xff]  ;;  %v1059_v46 = vld [vmem:[%s3314_s4 + $0x30] sm:$0xff]  ;;  %v1088_v31 = vld [vmem:[%s3314_s4 + $0x118] sm:$0xff] }
  0x9b   : > { %v419_v5 = vld [vmem:[#allocation2 + $0x62] sm:$0xff]  ;;  %v2596_v6 = vld [vmem:[#allocation2 + $0x70] sm:$0xff]  ;;  %2195 = vmatpush3.bf16.msra.mxu1 %v2194_v42  ;;  %v2198_v51 = vpack.c.bf16 %v1060_v47, %v1059_v46 }
  0x9c   : > { %615 = vrot.lane.b32.xlu0 %v2528_v50, %s2374_s10  ;;  %v444_v7 = vld [vmem:[#allocation2 + $0x72] sm:$0xff]  ;;  %v1077_v48 = vld [vmem:[%s3314_s4 + $0xc0] sm:$0xff]  ;;  %2197 = vmatprep.subr.bf16.mxu1 %v2196_v45 }
  0x9d   : > { %553 = vrot.lane.b32.xlu1 %v407_v55, %s2377_s17  ;;  %v436_v8 = vld [vmem:[#allocation2 + $0x71] sm:$0xff]  ;;  %v405_v9 = vld [vmem:[#allocation2 + $0x80] sm:$0xff]  ;;  %v2200_v54 = vpack.c.bf16 %v1078_v49, %v1077_v48 }
  0x9e   : > { %v413_v11 = vld [vmem:[#allocation2 + $0x81] sm:$0xff]  ;;  %v1107_v42 = vld [vmem:[%s3314_s4 + $0x1b0] sm:$0xff]  ;;  %v1092_v49 = vld [vmem:[%s3314_s4 + $0x138] sm:$0xff] }
  0x9f   : > { %v421_v24 = vld [vmem:[#allocation2 + $0x82] sm:$0xff]  ;;  %2199 = vmatpush3.bf16.msra.mxu1 %v2198_v51  ;;  %v1091_v48 = vld [vmem:[%s3314_s4 + $0x130] sm:$0xff] }
  0xa0   : > { %647 = vrot.lane.b32.xlu0 %v407_v55, %s2379_s27  ;;  %2201 = vmatprep.subr.bf16.mxu1 %v2200_v54  ;;  %v1089_v40 = vld [vmem:[%s3314_s4 + $0x120] sm:$0xff] }
  0xa1   : > { %585 = vrot.lane.b32.xlu1 %v415_v56, %s2378_s22 }
  0xa4   : > { %679 = vrot.lane.b32.xlu0 %v415_v56, %s2380_s28 }
  0xa5   : > { %617 = vrot.lane.b32.xlu1 %v2548_v57, %s2374_s10 }
  0xa8   : > { %681 = vrot.lane.b32.xlu0 %v440_v58, %s2380_s28 }
  0xa9   : > { %649 = vrot.lane.b32.xlu1 %v432_v59, %s2379_s27 }
  0xac   : > { %491 = vrot.lane.b32.xlu0 %v415_v56, %s2375_s11  ;;  %v1062_v56 = vld [vmem:[%s3314_s4 + $0x48] sm:$0xff] }
  0xad   : > { %459 = vrot.lane.b32.xlu1 %v407_v55, %s2373_s9  ;;  %v1061_v55 = vld [vmem:[%s3314_s4 + $0x40] sm:$0xff] }
  0xb0   : > { %523 = vrot.lane.b32.xlu0 %v2548_v57, %s2376_s12 }
  0xb1   : > { %461 = vrot.lane.b32.xlu1 %v432_v59, %s2373_s9 }
  0xb4   : > { %555 = vrot.lane.b32.xlu0 %v432_v59, %s2377_s17  ;;  %v2202_v59 = vpack.c.bf16 %v1062_v56, %v1061_v55 }
  0xb5   : > { %493 = vrot.lane.b32.xlu1 %v440_v58, %s2375_s11 }
  0xb6   : > { %2203 = vmatpush3.bf16.msra.mxu1 %v2202_v59 }
  0xb8   : > { %587 = vrot.lane.b32.xlu0 %v440_v58, %s2378_s22  ;;  %v374_v58 = vld [vmem:[#allocation2] sm:$0xff] }
  0xb9   : > { %525 = vrot.lane.b32.xlu1 %v2562_v60, %s2376_s12 }
  0xbc   : > { %619 = vrot.lane.b32.xlu0 %v2562_v60, %s2374_s10 }
  0xbd   : > { %557 = vrot.lane.b32.xlu1 %v409_v61, %s2377_s17 }
  0xc0   : > { %651 = vrot.lane.b32.xlu0 %v409_v61, %s2379_s27 }
  0xc1   : > { %589 = vrot.lane.b32.xlu1 %v417_v62, %s2378_s22 }
  0xc4   : > { %683 = vrot.lane.b32.xlu0 %v417_v62, %s2380_s28 }
  0xc5   : > { %621 = vrot.lane.b32.xlu1 %v2572_v63, %s2374_s10 }
  0xc8   : > { %685 = vrot.lane.b32.xlu0 %v442_v1, %s2380_s28 }
  0xc9   : > { %653 = vrot.lane.b32.xlu1 %v434_v2, %s2379_s27 }
  0xcc   : > { %495 = vrot.lane.b32.xlu0 %v417_v62, %s2375_s11 }
  0xcd   : > { %463 = vrot.lane.b32.xlu1 %v409_v61, %s2373_s9  ;;  %v703_v61 = vsel %vm343_vm0, %v374_v58, %v2610_v10 }
  0xd0   : > { %527 = vrot.lane.b32.xlu0 %v2572_v63, %s2376_s12 }
  0xd1   : > { %465 = vrot.lane.b32.xlu1 %v434_v2, %s2373_s9 }
  0xd4   : > { %559 = vrot.lane.b32.xlu0 %v434_v2, %s2377_s17  ;;  %v712_v2 = vsel %vm711_vm3, %v703_v61, %v2618_v13 }
  0xd5   : > { %497 = vrot.lane.b32.xlu1 %v442_v1, %s2375_s11 }
  0xd8   : > { %591 = vrot.lane.b32.xlu0 %v442_v1, %s2378_s22 }
  0xd9   : > { %529 = vrot.lane.b32.xlu1 %v2586_v3, %s2376_s12 }
  0xdc   : > { %623 = vrot.lane.b32.xlu0 %v2586_v3, %s2374_s10 }
  0xdd   : > { %561 = vrot.lane.b32.xlu1 %v411_v4, %s2377_s17 }
  0xe0   : > { %655 = vrot.lane.b32.xlu0 %v411_v4, %s2379_s27 }
  0xe1   : > { %593 = vrot.lane.b32.xlu1 %v419_v5, %s2378_s22 }
  0xe4   : > { %687 = vrot.lane.b32.xlu0 %v419_v5, %s2380_s28 }
  0xe5   : > { %625 = vrot.lane.b32.xlu1 %v2596_v6, %s2374_s10 }
  0xe8   : > { %689 = vrot.lane.b32.xlu0 %v444_v7, %s2380_s28 }
  0xe9   : > { %657 = vrot.lane.b32.xlu1 %v436_v8, %s2379_s27 }
  0xec   : > { %499 = vrot.lane.b32.xlu0 %v419_v5, %s2375_s11 }
  0xed   : > { %467 = vrot.lane.b32.xlu1 %v411_v4, %s2373_s9 }
  0xf0   : > { %531 = vrot.lane.b32.xlu0 %v2596_v6, %s2376_s12 }
  0xf1   : > { %469 = vrot.lane.b32.xlu1 %v436_v8, %s2373_s9 }
  0xf4   : > { %563 = vrot.lane.b32.xlu0 %v436_v8, %s2377_s17 }
  0xf5   : > { %501 = vrot.lane.b32.xlu1 %v444_v7, %s2375_s11 }
  0xf8   : > { %595 = vrot.lane.b32.xlu0 %v444_v7, %s2378_s22 }
  0xf9   : > { %533 = vrot.lane.b32.xlu1 %v405_v9, %s2376_s12 }
  0xfc   : > { %627 = vrot.lane.b32.xlu0 %v405_v9, %s2374_s10 }
  0xfd   : > { %565 = vrot.lane.b32.xlu1 %v413_v11, %s2377_s17 }
 0x100   : > { %659 = vrot.lane.b32.xlu0 %v413_v11, %s2379_s27 }
 0x101   : > { %597 = vrot.lane.b32.xlu1 %v421_v24, %s2378_s22 }
 0x102   : > { %v520_v34 = vpop.permute.xlu0 %519 }
 0x103   : > { %v458_v33 = vpop.permute.xlu1 %457  ;;  %v721_v4 = vsel %vm720_vm4, %v712_v2, %v520_v34  ;;  %v1106_v34 = vld [vmem:[%s3314_s4 + $0x1a8] sm:$0xff] }
 0x104   : > { %691 = vrot.lane.b32.xlu0 %v421_v24, %s2380_s28  ;;  %v704_v10 = vsel %vm343_vm0, %v2512_v39, %v458_v33  ;;  %v1086_v39 = vld [vmem:[%s3314_s4 + $0x108] sm:$0xff]  ;;  %v1105_v33 = vld [vmem:[%s3314_s4 + $0x1a0] sm:$0xff] }
 0x105   : > { %661 = vrot.lane.b32.xlu1 %v438_v30, %s2379_s27  ;;  %v2218_v27 = vpack.c.bf16 %v1086_v39, %v1085_v19  ;;  %v1087_v30 = vld [vmem:[%s3314_s4 + $0x110] sm:$0xff]  ;;  %v2224_v38 = vpack.c.bf16 %v1106_v34, %v1105_v33 }
 0x106   : > { %v552_v44 = vpop.permute.xlu0 %551  ;;  %v2222_v37 = vpack.c.bf16 %v1088_v31, %v1087_v30 }
 0x107   : > { %v490_v43 = vpop.permute.xlu1 %489  ;;  %v730_v8 = vsel %vm729_vm5, %v721_v4, %v552_v44 }
 0x108   : > { %v713_v13 = vsel %vm711_vm3, %v704_v10, %v490_v43  ;;  %v1108_v43 = vld [vmem:[%s3314_s4 + $0x1b8] sm:$0xff] }
 0x109   : > { %693 = vrot.lane.b32.xlu1 %v446_v41, %s2380_s28  ;;  %v1090_v41 = vld [vmem:[%s3314_s4 + $0x128] sm:$0xff]  ;;  %v2228_v47 = vpack.c.bf16 %v1108_v43, %v1107_v42  ;;  %s1848_s28 = sshll.u32 %s3320_s25, 6 }
 0x10a   : > { %v584_v53 = vpop.permute.xlu0 %583  ;;  %v2226_v46 = vpack.c.bf16 %v1090_v41, %v1089_v40  ;;  %s3297_s22 = scalar_lea.vmem %s3317_s7, %s1848_s28 }
 0x10b   : > { %v522_v52 = vpop.permute.xlu1 %521  ;;  %v739_v9 = vsel %vm738_vm6, %v730_v8, %v584_v53  ;;  %v2230_v53 = vpack.c.bf16 %v1092_v49, %v1091_v48 }
 0x10c   : > { %v722_v17 = vsel %vm720_vm4, %v713_v13, %v522_v52 }
 0x10e   : > { %v616_v1 = vpop.permute.xlu0 %615 }
 0x10f   : > { %v554_v62 = vpop.permute.xlu1 %553  ;;  %v748_v11 = vsel %vm747_vm7, %v739_v9, %v616_v1 }
 0x110   : > { %v731_v20 = vsel %vm729_vm5, %v722_v17, %v554_v62 }
 0x112   : > { %v648_v7 = vpop.permute.xlu0 %647 }
 0x113   : > { %v586_v5 = vpop.permute.xlu1 %585  ;;  %v757_v14 = vsel %vm756_vm8, %v748_v11, %v648_v7 }
 0x114   : > { %v740_v23 = vsel %vm738_vm6, %v731_v20, %v586_v5 }
 0x116   : > { %v680_v16 = vpop.permute.xlu0 %679 }
 0x117   : > { %v618_v15 = vpop.permute.xlu1 %617  ;;  %v766_v18 = vsel %vm765_vm9, %v757_v14, %v680_v16 }
 0x118   : > { %2120 = vmatprep.mubr.msk.f32.mxu0 %vm779_vm10, %v766_v18  ;;  %v749_v24 = vsel %vm747_vm7, %v740_v23, %v618_v15 }
 0x11a   : > { %v682_v26 = vpop.permute.xlu0 %681 }
 0x11b   : > { %v650_v25 = vpop.permute.xlu1 %649 }
 0x11c   : > { %v758_v28 = vsel %vm756_vm8, %v749_v24, %v650_v25 }
 0x11d   : > { %v767_v32 = vsel %vm765_vm9, %v758_v28, %v682_v26 }
 0x11e   : > { %2121 = vmatmul.mubr.msk.f32.vlgmr.msra.gmra.mrb[0].mxu0 %vm779_vm10, %v767_v32  ;;  %v492_v36 = vpop.permute.xlu0 %491 }
 0x11f   : > { %v460_v35 = vpop.permute.xlu1 %459  ;;  %2219 = vmatpush3.bf16.msra.mxu0 %v2218_v27 }
 0x120   : > { %2221 = vmatprep.subr.bf16.mxu0 %v2220_v29  ;;  %v705_v56 = vsel %vm343_vm0, %v2528_v50, %v460_v35 }
 0x121   : > { %v714_v61 = vsel %vm711_vm3, %v705_v56, %v492_v36 }
 0x122   : > { %v524_v45 = vpop.permute.xlu0 %523 }
 0x123   : > { %v462_v44 = vpop.permute.xlu1 %461  ;;  %2223 = vmatpush3.bf16.msra.mxu0 %v2222_v37  ;;  %v723_v62 = vsel %vm720_vm4, %v714_v61, %v524_v45  ;;  %v1080_v61 = vld [vmem:[%s3314_s4 + $0xd8] sm:$0xff] }
 0x124   : > { %2225 = vmatprep.subr.bf16.mxu0 %v2224_v38  ;;  %v706_v7 = vsel %vm343_vm0, %v2548_v57, %v462_v44 }
 0x126   : > { %v556_v52 = vpop.permute.xlu0 %555 }
 0x127   : > { %v494_v51 = vpop.permute.xlu1 %493  ;;  %2227 = vmatpush3.bf16.msra.mxu0 %v2226_v46  ;;  %v732_v4 = vsel %vm729_vm5, %v723_v62, %v556_v52 }
 0x128   : > { %2229 = vmatprep.subr.bf16.mxu0 %v2228_v47  ;;  %v715_v9 = vsel %vm711_vm3, %v706_v7, %v494_v51 }
 0x12a   : > { %v588_v55 = vpop.permute.xlu0 %587 }
 0x12b   : > { %v526_v54 = vpop.permute.xlu1 %525  ;;  %2231 = vmatpush3.bf16.msra.mxu0 %v2230_v53  ;;  %v741_v5 = vsel %vm738_vm6, %v732_v4, %v588_v55 }
 0x12c   : > { %v724_v13 = vsel %vm720_vm4, %v715_v9, %v526_v54  ;;  %v1082_v9 = vld [vmem:[%s3314_s4 + $0xe8] sm:$0xff] }
 0x12e   : > { %v620_v59 = vpop.permute.xlu0 %619 }
 0x12f   : > { %v558_v58 = vpop.permute.xlu1 %557  ;;  %v750_v8 = vsel %vm747_vm7, %v741_v5, %v620_v59  ;;  %v1079_v59 = vld [vmem:[%s3314_s4 + $0xd0] sm:$0xff] }
 0x130   : > { %v733_v15 = vsel %vm729_vm5, %v724_v13, %v558_v58  ;;  %v2204_v62 = vpack.c.bf16 %v1080_v61, %v1079_v59  ;;  %v1100_v59 = vld [vmem:[%s3314_s4 + $0x178] sm:$0xff] }
 0x132   : > { %v652_v2 = vpop.permute.xlu0 %651  ;;  %2205 = vmatprep.subr.bf16.mxu1 %v2204_v62 }
 0x133   : > { %v590_v1 = vpop.permute.xlu1 %589  ;;  %v759_v50 = vsel %vm756_vm8, %v750_v8, %v652_v2  ;;  %v1064_v2 = vld [vmem:[%s3314_s4 + $0x58] sm:$0xff]  ;;  %v1081_v8 = vld [vmem:[%s3314_s4 + $0xe0] sm:$0xff] }
 0x134   : > { %v742_v16 = vsel %vm738_vm6, %v733_v15, %v590_v1  ;;  %v1063_v1 = vld [vmem:[%s3314_s4 + $0x50] sm:$0xff] }
 0x135   : > { %v2206_v7 = vpack.c.bf16 %v1064_v2, %v1063_v1 }
 0x136   : > { %v684_v11 = vpop.permute.xlu0 %683 }
 0x137   : > { %v622_v10 = vpop.permute.xlu1 %621  ;;  %v768_v14 = vsel %vm765_vm9, %v759_v50, %v684_v11  ;;  %2207 = vmatpush3.bf16.msra.mxu1 %v2206_v7  ;;  %v2208_v50 = vpack.c.bf16 %v1082_v9, %v1081_v8  ;;  %v1066_v11 = vld [vmem:[%s3314_s4 + $0x68] sm:$0xff]  ;;  %v1117_v7 = vld [vmem:[%s3314_s4 + $0x200] sm:$0xff] }
 0x138   : > { %2123 = vmatprep.mubr.msk.f32.mxu0 %vm779_vm10, %v768_v14  ;;  %v751_v57 = vsel %vm747_vm7, %v742_v16, %v622_v10  ;;  %v1065_v10 = vld [vmem:[%s3314_s4 + $0x60] sm:$0xff]  ;;  %v1118_v8 = vld [vmem:[%s3314_s4 + $0x208] sm:$0xff] }
 0x139   : > { %v1109_v16 = vld [vmem:[%s3314_s4 + $0x1c0] sm:$0xff]  ;;  %2209 = vmatprep.subr.bf16.mxu1 %v2208_v50  ;;  %v2250_v9 = vpack.c.bf16 %v1118_v8, %v1117_v7  ;;  %v1135_v50 = vld [vmem:[%s3314_s4 + $0x290] sm:$0xff]  ;;  %v1168_v7 = vld [vmem:[%s3314_s4 + $0x398] sm:$0xff] }
 0x13a   : > { %v686_v18 = vpop.permute.xlu0 %685  ;;  %v996_v8 = vld [vmem:[#allocation3 + $0x2] sm:$0xff] }
 0x13b   : > { %v654_v17 = vpop.permute.xlu1 %653 }
 0x13c   : > { %v760_v19 = vsel %vm756_vm8, %v751_v57, %v654_v17  ;;  %v1110_v57 = vld [vmem:[%s3314_s4 + $0x1c8] sm:$0xff]  ;;  %v2210_v17 = vpack.c.bf16 %v1066_v11, %v1065_v10  ;;  %v1136_v10 = vld [vmem:[%s3314_s4 + $0x298] sm:$0xff] }
 0x13d   : > { %v769_v39 = vsel %vm765_vm9, %v760_v19, %v686_v18  ;;  %v2232_v18 = vpack.c.bf16 %v1110_v57, %v1109_v16  ;;  %v1093_v19 = vld [vmem:[%s3314_s4 + $0x140] sm:$0xff]  ;;  %v2252_v11 = vpack.c.bf16 %v1136_v10, %v1135_v50  ;;  %v1166_v57 = vld [vmem:[%s3314_s4 + $0x388] sm:$0xff] }
 0x13e   : > { %2124 = vmatmul.mubr.msk.f32.gmra.mrb[2].mxu0 %vm779_vm10, %v769_v39  ;;  %v496_v21 = vpop.permute.xlu0 %495  ;;  %2211 = vmatpush3.bf16.msra.mxu1 %v2210_v17 }
 0x13f   : > { %v464_v20 = vpop.permute.xlu1 %463  ;;  %2233 = vmatprep.subr.bf16.mxu0 %v2232_v18  ;;  %v1137_v18 = vld [vmem:[%s3314_s4 + $0x2a0] sm:$0xff] }
 0x140   : > { %v707_v28 = vsel %vm343_vm0, %v2562_v60, %v464_v20  ;;  %v1083_v20 = vld [vmem:[%s3314_s4 + $0xf0] sm:$0xff] }
 0x141   : > { %v716_v31 = vsel %vm711_vm3, %v707_v28, %v496_v21  ;;  %v1084_v21 = vld [vmem:[%s3314_s4 + $0xf8] sm:$0xff] }
 0x142   : > { %v528_v23 = vpop.permute.xlu0 %527 }
 0x143   : > { %v466_v22 = vpop.permute.xlu1 %465  ;;  %v725_v32 = vsel %vm720_vm4, %v716_v31, %v528_v23  ;;  %v2212_v23 = vpack.c.bf16 %v1084_v21, %v1083_v20  ;;  %v1112_v31 = vld [vmem:[%s3314_s4 + $0x1d8] sm:$0xff]  ;;  %v1122_v20 = vld [vmem:[%s3314_s4 + $0x228] sm:$0xff] }
 0x144   : > { %v708_v37 = vsel %vm343_vm0, %v2572_v63, %v466_v22 }
 0x145   : > { %2213 = vmatprep.subr.bf16.mxu1 %v2212_v23  ;;  %v1140_v23 = vld [vmem:[%s3314_s4 + $0x2b8] sm:$0xff] }
 0x146   : > { %v560_v25 = vpop.permute.xlu0 %559 }
 0x147   : > { %v498_v24 = vpop.permute.xlu1 %497  ;;  %v734_v35 = vsel %vm729_vm5, %v725_v32, %v560_v25  ;;  %v1068_v25 = vld [vmem:[%s3314_s4 + $0x78] sm:$0xff] }
 0x148   : > { %v717_v40 = vsel %vm711_vm3, %v708_v37, %v498_v24  ;;  %v1067_v24 = vld [vmem:[%s3314_s4 + $0x70] sm:$0xff] }
 0x149   : > { %v2214_v32 = vpack.c.bf16 %v1068_v25, %v1067_v24  ;;  %v1123_v25 = vld [vmem:[%s3314_s4 + $0x230] sm:$0xff] }
 0x14a   : > { %v592_v27 = vpop.permute.xlu0 %591 }
 0x14b   : > { %v530_v26 = vpop.permute.xlu1 %529  ;;  %v743_v36 = vsel %vm738_vm6, %v734_v35, %v592_v27  ;;  %2215 = vmatpush3.bf16.msra.mxu1 %v2214_v32  ;;  %v1126_v32 = vld [vmem:[%s3314_s4 + $0x248] sm:$0xff] }
 0x14c   : > { %v726_v43 = vsel %vm720_vm4, %v717_v40, %v530_v26 }
 0x14e   : > { %v624_v30 = vpop.permute.xlu0 %623 }
 0x14f   : > { %v562_v29 = vpop.permute.xlu1 %561  ;;  %v752_v38 = vsel %vm747_vm7, %v743_v36, %v624_v30  ;;  %v1111_v30 = vld [vmem:[%s3314_s4 + $0x1d0] sm:$0xff]  ;;  %v1096_v36 = vld [vmem:[%s3314_s4 + $0x158] sm:$0xff] }
 0x150   : > { %v735_v45 = vsel %vm729_vm5, %v726_v43, %v562_v29  ;;  %v2236_v35 = vpack.c.bf16 %v1112_v31, %v1111_v30  ;;  %v1125_v31 = vld [vmem:[%s3314_s4 + $0x240] sm:$0xff] }
 0x152   : > { %v656_v34 = vpop.permute.xlu0 %655 }
 0x153   : > { %v594_v33 = vpop.permute.xlu1 %593  ;;  %v761_v60 = vsel %vm756_vm8, %v752_v38, %v656_v34 }
 0x154   : > { %v744_v46 = vsel %vm738_vm6, %v735_v45, %v594_v33 }
 0x156   : > { %v688_v42 = vpop.permute.xlu0 %687 }
 0x157   : > { %v626_v41 = vpop.permute.xlu1 %625  ;;  %v770_v44 = vsel %vm765_vm9, %v761_v60, %v688_v42  ;;  %v988_v42 = vld [vmem:[#allocation3 + $0x1] sm:$0xff] }
 0x158   : > { %2126 = vmatprep.mubr.msk.f32.mxu0 %vm779_vm10, %v770_v44  ;;  %v753_v63 = vsel %vm747_vm7, %v744_v46, %v626_v41  ;;  %1261 = vmatprep.mubr.f32.mxu1 %v988_v42 }
 0x159   : > { %1262 = vmatmul.mubr.f32.vlgmr.msra.gmra.mrb[0].mxu1 %v2371_v0 }
 0x15a   : > { %v690_v48 = vpop.permute.xlu0 %689 }
 0x15b   : > { %v658_v47 = vpop.permute.xlu1 %657 }
 0x15c   : > { %v762_v49 = vsel %vm756_vm8, %v753_v63, %v658_v47  ;;  %v1113_v63 = vld [vmem:[%s3314_s4 + $0x1e0] sm:$0xff]  ;;  %v1114_v47 = vld [vmem:[%s3314_s4 + $0x1e8] sm:$0xff] }
 0x15d   : > { %v771_v51 = vsel %vm765_vm9, %v762_v49, %v690_v48  ;;  %v2240_v49 = vpack.c.bf16 %v1114_v47, %v1113_v63  ;;  %v1131_v47 = vld [vmem:[%s3314_s4 + $0x270] sm:$0xff] }
 0x15e   : > { %2127 = vmatmul.mubr.msk.f32.gmra.mrb[4].mxu0 %vm779_vm10, %v771_v51  ;;  %v500_v53 = vpop.permute.xlu0 %499  ;;  %v1097_v51 = vld [vmem:[%s3314_s4 + $0x160] sm:$0xff] }
 0x15f   : > { %v468_v52 = vpop.permute.xlu1 %467 }
 0x160   : > { %v709_v13 = vsel %vm343_vm0, %v2586_v3, %v468_v52  ;;  %v1094_v3 = vld [vmem:[%s3314_s4 + $0x148] sm:$0xff] }
 0x161   : > { %v2234_v39 = vpack.c.bf16 %v1094_v3, %v1093_v19  ;;  %v718_v22 = vsel %vm711_vm3, %v709_v13, %v500_v53  ;;  %v1098_v52 = vld [vmem:[%s3314_s4 + $0x168] sm:$0xff]  ;;  %v1119_v13 = vld [vmem:[%s3314_s4 + $0x210] sm:$0xff]  ;;  %v1121_v3 = vld [vmem:[%s3314_s4 + $0x220] sm:$0xff] }
 0x162   : > { %v532_v55 = vpop.permute.xlu0 %531  ;;  %v2242_v53 = vpack.c.bf16 %v1098_v52, %v1097_v51  ;;  %v1138_v19 = vld [vmem:[%s3314_s4 + $0x2a8] sm:$0xff]  ;;  %v2258_v21 = vpack.c.bf16 %v1122_v20, %v1121_v3  ;;  %v1181_v51 = vld [vmem:[%s3314_s4 + $0x400] sm:$0xff]  ;;  %v1172_v20 = vld [vmem:[%s3314_s4 + $0x3b8] sm:$0xff] }
 0x163   : > { %v470_v54 = vpop.permute.xlu1 %469  ;;  %v727_v27 = vsel %vm720_vm4, %v718_v22, %v532_v55  ;;  %2235 = vmatpush3.bf16.msra.mxu0 %v2234_v39  ;;  %v1116_v55 = vld [vmem:[%s3314_s4 + $0x1f8] sm:$0xff]  ;;  %v2256_v39 = vpack.c.bf16 %v1138_v19, %v1137_v18  ;;  %v1139_v22 = vld [vmem:[%s3314_s4 + $0x2b0] sm:$0xff]  ;;  %v1182_v52 = vld [vmem:[%s3314_s4 + $0x408] sm:$0xff] }
 0x164   : > { %v710_v26 = vsel %vm343_vm0, %v2596_v6, %v470_v54  ;;  %v1095_v6 = vld [vmem:[%s3314_s4 + $0x150] sm:$0xff]  ;;  %2237 = vmatprep.subr.bf16.mxu0 %v2236_v35  ;;  %v2260_v24 = vpack.c.bf16 %v1140_v23, %v1139_v22  ;;  %v1144_v35 = vld [vmem:[%s3314_s4 + $0x2d8] sm:$0xff]  ;;  %v1153_v18 = vld [vmem:[%s3314_s4 + $0x320] sm:$0xff] }
 0x165   : > { %v2238_v40 = vpack.c.bf16 %v1096_v36, %v1095_v6  ;;  %v1115_v54 = vld [vmem:[%s3314_s4 + $0x1f0] sm:$0xff]  ;;  %v1154_v19 = vld [vmem:[%s3314_s4 + $0x328] sm:$0xff] }
 0x166   : > { %v564_v58 = vpop.permute.xlu0 %563  ;;  %v2244_v0 = vpack.c.bf16 %v1116_v55, %v1115_v54  ;;  %v1127_v36 = vld [vmem:[%s3314_s4 + $0x250] sm:$0xff]  ;;  %v3014_v54 = vld [vmem:[%s3312_s2] ss:$0 sm:$0xff] }
 0x167   : > { %v502_v56 = vpop.permute.xlu1 %501  ;;  %v736_v34 = vsel %vm729_vm5, %v727_v27, %v564_v58  ;;  %2239 = vmatpush3.bf16.msra.mxu0 %v2238_v40  ;;  %v1145_v40 = vld [vmem:[%s3314_s4 + $0x2e0] sm:$0xff]  ;;  %v1155_v23 = vld [vmem:[%s3314_s4 + $0x330] sm:$0xff] }
 0x168   : > { %v719_v33 = vsel %vm711_vm3, %v710_v26, %v502_v56  ;;  %v1099_v56 = vld [vmem:[%s3314_s4 + $0x170] sm:$0xff]  ;;  %2241 = vmatprep.subr.bf16.mxu0 %v2240_v49  ;;  %v1124_v26 = vld [vmem:[%s3314_s4 + $0x238] sm:$0xff] }
 0x169   : > { %v2246_v1 = vpack.c.bf16 %v1100_v59, %v1099_v56  ;;  %v2262_v27 = vpack.c.bf16 %v1124_v26, %v1123_v25  ;;  %v3019_v56 = vld [vmem:[%s3313_s3] ss:$0 sm:$0xff]  ;;  %v1174_v26 = vld [vmem:[%s3314_s4 + $0x3c8] sm:$0xff] }
 0x16a   : > { %v596_v5 = vpop.permute.xlu0 %595  ;;  %v1173_v25 = vld [vmem:[%s3314_s4 + $0x3c0] sm:$0xff] }
 0x16b   : > { %v534_v4 = vpop.permute.xlu1 %533  ;;  %v745_v38 = vsel %vm738_vm6, %v736_v34, %v596_v5  ;;  %2243 = vmatpush3.bf16.msra.mxu0 %v2242_v53  ;;  %v1143_v34 = vld [vmem:[%s3314_s4 + $0x2d0] sm:$0xff]  ;;  %v3008_v53 = vpack.c.bf16 %v1182_v52, %v1181_v51 }
 0x16c   : > { %v728_v37 = vsel %vm720_vm4, %v719_v33, %v534_v4  ;;  %2245 = vmatprep.subr.bf16.mxu0 %v2244_v0  ;;  %v1134_v4 = vld [vmem:[%s3314_s4 + $0x288] sm:$0xff]  ;;  %v2266_v33 = vpack.c.bf16 %v1126_v32, %v1125_v31  ;;  %v2268_v6 = vpack.c.bf16 %v1144_v35, %v1143_v34  ;;  %v1175_v31 = vld [vmem:[%s3314_s4 + $0x3d0] sm:$0xff]  ;;  %v1176_v32 = vld [vmem:[%s3314_s4 + $0x3d8] sm:$0xff] }
 0x16d   : > { %v2300_v34 = vpack.c.bf16 %v1176_v32, %v1175_v31  ;;  %v1159_v35 = vld [vmem:[%s3314_s4 + $0x350] sm:$0xff] }
 0x16e   : > { %v628_v15 = vpop.permute.xlu0 %627 }
 0x16f   : > { %v566_v14 = vpop.permute.xlu1 %565  ;;  %v754_v41 = vsel %vm747_vm7, %v745_v38, %v628_v15  ;;  %2247 = vmatpush3.bf16.msra.mxu0 %v2246_v1  ;;  %v1165_v15 = vld [vmem:[%s3314_s4 + $0x380] sm:$0xff] }
 0x170   : > { %v737_v60 = vsel %vm729_vm5, %v728_v37, %v566_v14  ;;  %v1120_v14 = vld [vmem:[%s3314_s4 + $0x218] sm:$0xff]  ;;  %v2280_v17 = vpack.c.bf16 %v1166_v57, %v1165_v15  ;;  %v1170_v15 = vld [vmem:[%s3314_s4 + $0x3a8] sm:$0xff] }
 0x171   : > { %v2254_v16 = vpack.c.bf16 %v1120_v14, %v1119_v13  ;;  %v1128_v37 = vld [vmem:[%s3314_s4 + $0x258] sm:$0xff]  ;;  %v1169_v14 = vld [vmem:[%s3314_s4 + $0x3a0] sm:$0xff] }
 0x172   : > { %v660_v29 = vpop.permute.xlu0 %659  ;;  %2281 = vmatprep.subr.bf16.mxu0 %v2280_v17  ;;  %v2270_v38 = vpack.c.bf16 %v1128_v37, %v1127_v36  ;;  %v1152_v13 = vld [vmem:[%s3314_s4 + $0x318] sm:$0xff]  ;;  %v2288_v17 = vpack.c.bf16 %v1170_v15, %v1169_v14  ;;  %v1177_v37 = vld [vmem:[%s3314_s4 + $0x3e0] sm:$0xff] }
 0x173   : > { %v598_v28 = vpop.permute.xlu1 %597  ;;  %v763_v44 = vsel %vm756_vm8, %v754_v41, %v660_v29  ;;  %v1142_v29 = vld [vmem:[%s3314_s4 + $0x2c8] sm:$0xff]  ;;  %v1129_v41 = vld [vmem:[%s3314_s4 + $0x260] sm:$0xff] }
 0x174   : > { %v746_v43 = vsel %vm738_vm6, %v737_v60, %v598_v28  ;;  %v1141_v28 = vld [vmem:[%s3314_s4 + $0x2c0] sm:$0xff]  ;;  %v1146_v60 = vld [vmem:[%s3314_s4 + $0x2e8] sm:$0xff] }
 0x175   : > { %v755_v58 = vsel %vm747_vm7, %v746_v43, %v2616_v12  ;;  %v1133_v12 = vld [vmem:[%s3314_s4 + $0x280] sm:$0xff]  ;;  %v2264_v30 = vpack.c.bf16 %v1142_v29, %v1141_v28  ;;  %v2272_v42 = vpack.c.bf16 %v1146_v60, %v1145_v40  ;;  %v1130_v43 = vld [vmem:[%s3314_s4 + $0x268] sm:$0xff]  ;;  %v2296_v28 = vpack.c.bf16 %v1174_v26, %v1173_v25 }
 0x176   : > { %v692_v46 = vpop.permute.xlu0 %691  ;;  %v2248_v5 = vpack.c.bf16 %v1134_v4, %v1133_v12  ;;  %v1149_v12 = vld [vmem:[%s3314_s4 + $0x300] sm:$0xff]  ;;  %v1150_v4 = vld [vmem:[%s3314_s4 + $0x308] sm:$0xff] }
 0x177   : > { %v662_v45 = vpop.permute.xlu1 %661  ;;  %v772_v48 = vsel %vm765_vm9, %v763_v44, %v692_v46  ;;  %v2274_v44 = vpack.c.bf16 %v1130_v43, %v1129_v41  ;;  %v1148_v46 = vld [vmem:[%s3314_s4 + $0x2f8] sm:$0xff]  ;;  %v1157_v29 = vld [vmem:[%s3314_s4 + $0x340] sm:$0xff] }
 0x178   : > { %2129 = vmatprep.mubr.msk.f32.mxu0 %vm779_vm10, %v772_v48  ;;  %v764_v61 = vsel %vm756_vm8, %v755_v58, %v662_v45  ;;  %2249 = vmatprep.subr.bf16.mxu1 %v2248_v5  ;;  %v1147_v45 = vld [vmem:[%s3314_s4 + $0x2f0] sm:$0xff]  ;;  %v1132_v48 = vld [vmem:[%s3314_s4 + $0x278] sm:$0xff] }
 0x179   : > { %2251 = vmatpush3.bf16.msra.mxu1 %v2250_v9  ;;  %v2276_v63 = vpack.c.bf16 %v1148_v46, %v1147_v45  ;;  %v2278_v49 = vpack.c.bf16 %v1132_v48, %v1131_v47  ;;  %v1167_v5 = vld [vmem:[%s3314_s4 + $0x390] sm:$0xff]  ;;  %v2282_v9 = vpack.c.bf16 %v1150_v4, %v1149_v12  ;;  %v1161_v45 = vld [vmem:[%s3314_s4 + $0x360] sm:$0xff]  ;;  %v1162_v46 = vld [vmem:[%s3314_s4 + $0x368] sm:$0xff] }
 0x17a   : > { %2253 = vmatprep.subr.bf16.mxu1 %v2252_v11  ;;  %v2284_v10 = vpack.c.bf16 %v1168_v7, %v1167_v5  ;;  %v1151_v11 = vld [vmem:[%s3314_s4 + $0x310] sm:$0xff]  ;;  %v1180_v48 = vld [vmem:[%s3314_s4 + $0x3f8] sm:$0xff]  ;;  %v2306_v52 = vpack.c.bf16 %v1162_v46, %v1161_v45 }
 0x17b   : > { %v694_v62 = vpop.permute.xlu1 %693  ;;  %v2286_v57 = vpack.c.bf16 %v1152_v13, %v1151_v11  ;;  %v1179_v47 = vld [vmem:[%s3314_s4 + $0x3f0] sm:$0xff] }
 0x17c   : > { %v773_v2 = vsel %vm765_vm9, %v764_v61, %v694_v62  ;;  %v1044_v46 = vld [vmem:[#allocation3 + $0x91] sm:$0xff] }
 0x17d   : > { %2130 = vmatmul.mubr.msk.f32.gmra.mrb[6].mxu0 %vm779_vm10, %v773_v2  ;;  %2255 = vmatpush3.bf16.msra.mxu1 %v2254_v16 }
 0x17e   : > { %2257 = vmatprep.subr.bf16.mxu1 %v2256_v39  ;;  %v1171_v39 = vld [vmem:[%s3314_s4 + $0x3b0] sm:$0xff] }
 0x17f   : > { %v2292_v22 = vpack.c.bf16 %v1172_v20, %v1171_v39 }
 0x181   : > { %2259 = vmatpush3.bf16.msra.mxu1 %v2258_v21  ;;  %v2290_v21 = vpack.c.bf16 %v1154_v19, %v1153_v18 }
 0x182   : > { %2261 = vmatprep.subr.bf16.mxu1 %v2260_v24  ;;  %v1156_v24 = vld [vmem:[%s3314_s4 + $0x338] sm:$0xff] }
 0x185   : > { %2263 = vmatpush3.bf16.msra.mxu1 %v2262_v27  ;;  %v2294_v27 = vpack.c.bf16 %v1156_v24, %v1155_v23 }
 0x186   : > { %2265 = vmatprep.subr.bf16.mxu1 %v2264_v30  ;;  %v1158_v30 = vld [vmem:[%s3314_s4 + $0x348] sm:$0xff] }
 0x189   : > { %2267 = vmatpush3.bf16.msra.mxu1 %v2266_v33  ;;  %v2298_v33 = vpack.c.bf16 %v1158_v30, %v1157_v29  ;;  %v1184_v29 = vld [vmem:[%s3314_s4 + $0x418] sm:$0xff] }
 0x18a   : > { %2269 = vmatprep.subr.bf16.mxu1 %v2268_v6  ;;  %v1160_v6 = vld [vmem:[%s3314_s4 + $0x358] sm:$0xff] }
 0x18d   : > { %2271 = vmatpush3.bf16.msra.mxu1 %v2270_v38  ;;  %v1178_v38 = vld [vmem:[%s3314_s4 + $0x3e8] sm:$0xff] }
 0x18e   : > { %2273 = vmatprep.subr.bf16.mxu1 %v2272_v42  ;;  %v2302_v42 = vpack.c.bf16 %v1160_v6, %v1159_v35  ;;  %v1188_v35 = vld [vmem:[%s3314_s4 + $0x438] sm:$0xff]  ;;  %v1190_v6 = vld [vmem:[%s3314_s4 + $0x448] sm:$0xff] }
 0x191   : > { %2275 = vmatpush3.bf16.msra.mxu1 %v2274_v44  ;;  %v2304_v44 = vpack.c.bf16 %v1178_v38, %v1177_v37  ;;  %v1192_v37 = vld [vmem:[%s3314_s4 + $0x458] sm:$0xff] }
 0x192   : > { %2277 = vmatprep.subr.bf16.mxu1 %v2276_v63 }
 0x195   : > { %2279 = vmatpush3.bf16.msra.mxu1 %v2278_v49 }
 0x196   : > { %2313 = vmatprep.subr.bf16.mxu1 %v3008_v53 }
 0x1f1   : > { %v2122_v55 = vpop.f32.mrb[0].mxu0 }
 0x1f2   : > { %v921_v58 = vmul.f32 %v2122_v55, %v3014_v54  ;;  %v874_v0 = vpop.f32.mrb[1].mxu0  ;;  %v2308_v55 = vpack.c.bf16 %v1180_v48, %v1179_v47  ;;  %v1052_v47 = vld [vmem:[#allocation3 + $0x92] sm:$0xff] }
 0x1f3   : > { %v920_v59 = vmul.f32 %v3014_v54, %v874_v0  ;;  %v1164_v0 = vld [vmem:[%s3314_s4 + $0x378] sm:$0xff] }
 0x1f4   : > { %v936_v61 = vadd.f32 %v3019_v56, %v921_v58  ;;  %v1163_v58 = vld [vmem:[%s3314_s4 + $0x370] sm:$0xff] }
 0x1f5   : > { %v935_v62 = vadd.f32 %v3019_v56, %v920_v59  ;;  %v2310_v59 = vpack.c.bf16 %v1164_v0, %v1163_v58 }
 0x1f6   : > { %v3025_v1 = vmax.f32 %v936_v61, 0.0 }
 0x1f7   : > { %v3027_v2 = vmax.f32 %v935_v62, 0.0 }
 0x1f8   : > { %973 = vst [vmem:[#allocation3 + $0x21] sm:$0xff] %v3025_v1 }
 0x1f9   : > { %972 = vst [vmem:[#allocation3 + $0x11] sm:$0xff] %v3027_v2  ;;  %1266 = vmatprep.mubr.f32.mxu1 %v3027_v2 }
 0x1ff   : > { %v3057_v16 = vld [vmem:[#allocation3 + $0x20] sm:$0xff] }
 0x200   : > { %v1004_v50 = vld [vmem:[#allocation3 + $0x10] sm:$0xff]  ;;  %v3145_v62 = vld [vmem:[#allocation3 + $0x22] sm:$0xff] }
 0x201   : > { %1366 = vmatprep.mubr.f32.mxu0 %v1004_v50  ;;  %1267 = vmatmul.mubr.f32.gmra.mrb[2].mxu1 %v1004_v50  ;;  %v3067_v3 = vld [vmem:[#allocation3 + $0x12] sm:$0xff] }
 0x202   : > { %1367 = vmatmul.mubr.f32.vlgmr.msra.gmra.mrb[8].mxu0 %v996_v8  ;;  %1271 = vmatprep.mubr.f32.mxu1 %v3025_v1 }
 0x203   : > { %1371 = vmatprep.mubr.f32.mxu0 %v3057_v16  ;;  %2283 = vmatpush3.bf16.msra.mxu0 %v2282_v9 }
 0x204   : > { %2285 = vmatprep.subr.bf16.mxu0 %v2284_v10 }
 0x205   : > { %1272 = vmatmul.mubr.f32.gmra.mrb[4].mxu1 %v3057_v16 }
 0x206   : > { %1372 = vmatmul.mubr.f32.gmra.mrb[10].mxu0 %v3067_v3 }
 0x207   : > { %2287 = vmatpush3.bf16.msra.mxu0 %v2286_v57 }
 0x208   : > { %2289 = vmatprep.subr.bf16.mxu0 %v2288_v17 }
 0x20b   : > { %2291 = vmatpush3.bf16.msra.mxu0 %v2290_v21 }
 0x20c   : > { %2293 = vmatprep.subr.bf16.mxu0 %v2292_v22 }
 0x20f   : > { %2295 = vmatpush3.bf16.msra.mxu0 %v2294_v27 }
 0x210   : > { %2297 = vmatprep.subr.bf16.mxu0 %v2296_v28 }
 0x211   : > { %v2125_v36 = vpop.f32.mrb[2].mxu0 }
 0x212   : > { %v923_v40 = vmul.f32 %v2125_v36, %v3014_v54  ;;  %v884_v60 = vpop.f32.mrb[3].mxu0  ;;  %v1191_v36 = vld [vmem:[%s3314_s4 + $0x450] sm:$0xff] }
 0x213   : > { %v922_v41 = vmul.f32 %v3014_v54, %v884_v60  ;;  %2299 = vmatpush3.bf16.msra.mxu0 %v2298_v33  ;;  %v1185_v33 = vld [vmem:[%s3314_s4 + $0x420] sm:$0xff]  ;;  %v2332_v38 = vpack.c.bf16 %v1192_v37, %v1191_v36  ;;  %v1194_v60 = vld [vmem:[%s3314_s4 + $0x468] sm:$0xff] }
 0x214   : > { %v938_v43 = vadd.f32 %v3019_v56, %v923_v40  ;;  %2301 = vmatprep.subr.bf16.mxu0 %v2300_v34  ;;  %v1186_v34 = vld [vmem:[%s3314_s4 + $0x428] sm:$0xff]  ;;  %v1193_v40 = vld [vmem:[%s3314_s4 + $0x460] sm:$0xff] }
 0x215   : > { %v937_v63 = vadd.f32 %v3019_v56, %v922_v41  ;;  %v2336_v41 = vpack.c.bf16 %v1194_v60, %v1193_v40 }
 0x216   : > { %v3128_v49 = vmax.f32 %v938_v43, 0.0  ;;  %v1196_v43 = vld [vmem:[%s3314_s4 + $0x478] sm:$0xff] }
 0x217   : > { %v3130_v51 = vmax.f32 %v937_v63, 0.0  ;;  %2303 = vmatpush3.bf16.msra.mxu0 %v2302_v42  ;;  %v1195_v42 = vld [vmem:[%s3314_s4 + $0x470] sm:$0xff]  ;;  %v2362_v63 = vld [vmem:[#allocation3] sm:$0xff] }
 0x218   : > { %975 = vst [vmem:[#allocation3 + $0x41] sm:$0xff] %v3128_v49  ;;  %2305 = vmatprep.subr.bf16.mxu0 %v2304_v44  ;;  %v2340_v44 = vpack.c.bf16 %v1196_v43, %v1195_v42 }
 0x219   : > { %974 = vst [vmem:[#allocation3 + $0x31] sm:$0xff] %v3130_v51  ;;  %1276 = vmatprep.mubr.f32.mxu1 %v3130_v51 }
 0x21b   : > { %2307 = vmatpush3.bf16.msra.mxu0 %v2306_v52 }
 0x21c   : > { %2309 = vmatprep.subr.bf16.mxu0 %v2308_v55 }
 0x21f   : > { %2311 = vmatpush3.bf16.msra.mxu0 %v2310_v59  ;;  %v3149_v12 = vld [vmem:[#allocation3 + $0x40] sm:$0xff] }
 0x220   : > { %v3141_v61 = vld [vmem:[#allocation3 + $0x30] sm:$0xff]  ;;  %v3171_v15 = vld [vmem:[#allocation3 + $0x42] sm:$0xff] }
 0x221   : > { %1376 = vmatprep.mubr.f32.mxu0 %v3141_v61  ;;  %1277 = vmatmul.mubr.f32.gmra.mrb[6].mxu1 %v3141_v61  ;;  %v3153_v4 = vld [vmem:[#allocation3 + $0x32] sm:$0xff] }
 0x222   : > { %1377 = vmatmul.mubr.f32.gmra.mrb[12].mxu0 %v3145_v62  ;;  %1281 = vmatprep.mubr.f32.mxu1 %v3128_v49 }
 0x223   : > { %1381 = vmatprep.mubr.f32.mxu0 %v3149_v12 }
 0x225   : > { %1282 = vmatmul.mubr.f32.gmra.mrb[8].mxu1 %v3149_v12 }
 0x226   : > { %1382 = vmatmul.mubr.f32.gmra.mrb[14].mxu0 %v3153_v4 }
 0x22c   : > { %v1894_v18 = vpop.f32.mrb[0].mxu1 }
 0x22d   : > { %v1895_v19 = vpop.f32.mrb[1].mxu1 }
 0x22e   : > { %v3182_v39 = vadd.f32 %v1895_v19, %v1894_v18 }
 0x231   : > { %v2128_v5 = vpop.f32.mrb[4].mxu0 }
 0x232   : > { %v925_v7 = vmul.f32 %v2128_v5, %v3014_v54  ;;  %v894_v8 = vpop.f32.mrb[5].mxu0 }
 0x233   : > { %v924_v9 = vmul.f32 %v3014_v54, %v894_v8 }
 0x234   : > { %v940_v50 = vadd.f32 %v3019_v56, %v925_v7 }
 0x235   : > { %v939_v10 = vadd.f32 %v3019_v56, %v924_v9 }
 0x236   : > { %v3160_v11 = vmax.f32 %v940_v50, 0.0 }
 0x237   : > { %v3162_v13 = vmax.f32 %v939_v10, 0.0 }
 0x238   : > { %977 = vst [vmem:[#allocation3 + $0x61] sm:$0xff] %v3160_v11 }
 0x239   : > { %976 = vst [vmem:[#allocation3 + $0x51] sm:$0xff] %v3162_v13  ;;  %1286 = vmatprep.mubr.f32.mxu1 %v3162_v13 }
 0x23f   : > { %v3175_v57 = vld [vmem:[#allocation3 + $0x60] sm:$0xff] }
 0x240   : > { %v3167_v14 = vld [vmem:[#allocation3 + $0x50] sm:$0xff] }
 0x241   : > { %1386 = vmatprep.mubr.f32.mxu0 %v3167_v14  ;;  %1287 = vmatmul.mubr.f32.gmra.mrb[10].mxu1 %v3167_v14  ;;  %v3179_v17 = vld [vmem:[#allocation3 + $0x52] sm:$0xff] }
 0x242   : > { %1387 = vmatmul.mubr.f32.gmra.mrb[16].mxu0 %v3171_v15  ;;  %1291 = vmatprep.mubr.f32.mxu1 %v3160_v11 }
 0x243   : > { %1391 = vmatprep.mubr.f32.mxu0 %v3175_v57 }
 0x245   : > { %1292 = vmatmul.mubr.f32.gmra.mrb[12].mxu1 %v3175_v57 }
 0x246   : > { %1392 = vmatmul.mubr.f32.gmra.mrb[18].mxu0 %v3179_v17 }
 0x250   : > { %v2131_v20 = vpop.f32.mrb[6].mxu0 }
 0x251   : > { %v927_v21 = vmul.f32 %v2131_v20, %v3014_v54  ;;  %v904_v22 = vpop.f32.mrb[7].mxu0 }
 0x252   : > { %v926_v23 = vmul.f32 %v3014_v54, %v904_v22  ;;  %v3199_v54 = vld [vmem:[#allocation3 + $0x62] sm:$0xff] }
 0x253   : > { %v942_v24 = vadd.f32 %v3019_v56, %v927_v21 }
 0x254   : > { %v941_v25 = vadd.f32 %v3019_v56, %v926_v23  ;;  %v1183_v56 = vld [vmem:[%s3314_s4 + $0x410] sm:$0xff] }
 0x255   : > { %v3188_v26 = vmax.f32 %v942_v24, 0.0  ;;  %v2316_v31 = vpack.c.bf16 %v1184_v29, %v1183_v56 }
 0x256   : > { %v3190_v27 = vmax.f32 %v941_v25, 0.0 }
 0x257   : > { %979 = vst [vmem:[#allocation3 + $0x81] sm:$0xff] %v3188_v26 }
 0x258   : > { %978 = vst [vmem:[#allocation3 + $0x71] sm:$0xff] %v3190_v27  ;;  %1296 = vmatprep.mubr.f32.mxu1 %v3190_v27 }
 0x25e   : > { %v3208_v30 = vld [vmem:[#allocation3 + $0x80] sm:$0xff] }
 0x25f   : > { %v3195_v28 = vld [vmem:[#allocation3 + $0x70] sm:$0xff]  ;;  %v1027_v45 = vld [vmem:[#allocation3 + $0x82] sm:$0xff] }
 0x260   : > { %1396 = vmatprep.mubr.f32.mxu0 %v3195_v28  ;;  %1297 = vmatmul.mubr.f32.gmra.mrb[14].mxu1 %v3195_v28  ;;  %v3212_v32 = vld [vmem:[#allocation3 + $0x72] sm:$0xff] }
 0x261   : > { %1397 = vmatmul.mubr.f32.gmra.mrb[20].mxu0 %v3199_v54  ;;  %1471 = vmatprep.mubr.f32.mxu1 %v3067_v3  ;;  %v2320_v3 = vpack.c.bf16 %v1186_v34, %v1185_v33 }
 0x262   : > { %1401 = vmatprep.mubr.f32.mxu0 %v3208_v30 }
 0x264   : > { %1472 = vmatmul.mubr.f32.vlgmr.msra.gmra.mrb[16].mxu1 %v3027_v2  ;;  %v1187_v2 = vld [vmem:[%s3314_s4 + $0x430] sm:$0xff] }
 0x265   : > { %1402 = vmatmul.mubr.f32.gmra.mrb[22].mxu0 %v3212_v32  ;;  %2315 = vmatpush3.bf16.msra.mxu1 %v3008_v53  ;;  %v2324_v53 = vpack.c.bf16 %v1188_v35, %v1187_v2 }
 0x266   : > { %1476 = vmatprep.mubr.f32.mxu1 %v3145_v62  ;;  %1576 = vmatprep.mubr.f32.mxu0 %v3025_v1 }
 0x267   : > { %2317 = vmatprep.subr.bf16.mxu1 %v2316_v31 }
 0x268   : > { %1477 = vmatmul.mubr.f32.gmra.mrb[18].mxu1 %v3025_v1  ;;  %v1189_v1 = vld [vmem:[%s3314_s4 + $0x440] sm:$0xff] }
 0x269   : > { %1577 = vmatmul.mubr.f32.vlgmr.msra.gmra.mrb[24].mxu0 %v3057_v16  ;;  %2319 = vmatpush3.bf16.msra.mxu1 %v2316_v31  ;;  %v2328_v16 = vpack.c.bf16 %v1190_v6, %v1189_v1 }
 0x26a   : > { %1481 = vmatprep.mubr.f32.mxu1 %v3153_v4  ;;  %1581 = vmatprep.mubr.f32.mxu0 %v3130_v51 }
 0x26b   : > { %2321 = vmatprep.subr.bf16.mxu1 %v2320_v3 }
 0x26c   : > { %1482 = vmatmul.mubr.f32.gmra.mrb[20].mxu1 %v3130_v51 }
 0x26d   : > { %1582 = vmatmul.mubr.f32.gmra.mrb[26].mxu0 %v3141_v61  ;;  %2323 = vmatpush3.bf16.msra.mxu1 %v2320_v3 }
 0x26e   : > { %1486 = vmatprep.mubr.f32.mxu1 %v3171_v15  ;;  %1586 = vmatprep.mubr.f32.mxu0 %v3128_v49 }
 0x26f   : > { %2325 = vmatprep.subr.bf16.mxu1 %v2324_v53 }
 0x270   : > { %1487 = vmatmul.mubr.f32.gmra.mrb[22].mxu1 %v3128_v49 }
 0x271   : > { %1587 = vmatmul.mubr.f32.gmra.mrb[28].mxu0 %v3149_v12  ;;  %2327 = vmatpush3.bf16.msra.mxu1 %v2324_v53 }
 0x272   : > { %1491 = vmatprep.mubr.f32.mxu1 %v3179_v17  ;;  %1591 = vmatprep.mubr.f32.mxu0 %v3162_v13 }
 0x273   : > { %2329 = vmatprep.subr.bf16.mxu1 %v2328_v16 }
 0x274   : > { %1492 = vmatmul.mubr.f32.gmra.mrb[24].mxu1 %v3162_v13 }
 0x275   : > { %1592 = vmatmul.mubr.f32.gmra.mrb[30].mxu0 %v3167_v14  ;;  %2331 = vmatpush3.bf16.msra.mxu1 %v2328_v16 }
 0x276   : > { %1496 = vmatprep.mubr.f32.mxu1 %v3199_v54  ;;  %1596 = vmatprep.mubr.f32.mxu0 %v3160_v11 }
 0x277   : > { %2333 = vmatprep.subr.bf16.mxu1 %v2332_v38 }
 0x278   : > { %1497 = vmatmul.mubr.f32.gmra.mrb[26].mxu1 %v3160_v11 }
 0x279   : > { %1597 = vmatmul.mubr.f32.gmra.mrb[32].mxu0 %v3175_v57  ;;  %2335 = vmatpush3.bf16.msra.mxu1 %v2332_v38 }
 0x27a   : > { %1501 = vmatprep.mubr.f32.mxu1 %v3212_v32  ;;  %1601 = vmatprep.mubr.f32.mxu0 %v3190_v27 }
 0x27b   : > { %2337 = vmatprep.subr.bf16.mxu1 %v2336_v41 }
 0x27c   : > { %1502 = vmatmul.mubr.f32.gmra.mrb[28].mxu1 %v3190_v27 }
 0x27d   : > { %1602 = vmatmul.mubr.f32.gmra.mrb[34].mxu0 %v3195_v28  ;;  %2339 = vmatpush3.bf16.msra.mxu1 %v2336_v41 }
 0x27e   : > { %1506 = vmatprep.mubr.f32.mxu1 %v1027_v45  ;;  %1606 = vmatprep.mubr.f32.mxu0 %v3188_v26 }
 0x27f   : > { %2341 = vmatprep.subr.bf16.mxu1 %v2340_v44 }
 0x280   : > { %1507 = vmatmul.mubr.f32.gmra.mrb[30].mxu1 %v3188_v26 }
 0x281   : > { %1607 = vmatmul.mubr.f32.gmra.mrb[36].mxu0 %v3208_v30  ;;  %2343 = vmatpush3.bf16.msra.mxu1 %v2340_v44 }
 0x282   : > { %2164 = vmatprep.mubr.f32.mxu1 %v3145_v62  ;;  %1611 = vmatprep.mubr.f32.mxu0 %v1044_v46 }
 0x284   : > { %2165 = vmatmul.mubr.f32.vlgmr.msra.gmra.mrb[32].mxu1 %v3153_v4 }
 0x285   : > { %1612 = vmatmul.mubr.f32.gmra.mrb[38].mxu0 %v2362_v63  ;;  %2167 = vmatprep.mubr.f32.mxu1 %v3171_v15 }
 0x288   : > { %2168 = vmatmul.mubr.f32.gmra.mrb[34].mxu1 %v3179_v17 }
 0x289   : > { %2170 = vmatprep.mubr.f32.mxu1 %v3199_v54 }
 0x28c   : > { %2171 = vmatmul.mubr.f32.gmra.mrb[36].mxu1 %v3212_v32 }
 0x28d   : > { %2173 = vmatprep.mubr.f32.mxu1 %v1027_v45 }
 0x290   : > { %2174 = vmatmul.mubr.f32.gmra.mrb[38].mxu1 %v1052_v47 }
 0x2d4   : > { %v1897_v48 = vpop.f32.mrb[2].mxu1 }
 0x2d5   : > { %v1898_v49 = vpop.f32.mrb[3].mxu1  ;;  %v1950_v51 = vpop.f32.mrb[8].mxu0 }
 0x2d6   : > { %v1899_v52 = vadd.f32 %v1898_v49, %v1897_v48  ;;  %v1951_v55 = vpop.f32.mrb[9].mxu0 }
 0x2d7   : > { %v1952_v58 = vadd.f32 %v1951_v55, %v1950_v51 }
 0x2d8   : > { %v1900_v0 = vpop.f32.mrb[4].mxu1 }
 0x2d9   : > { %v1369_v59 = vadd.f32 %v1952_v58, %v3182_v39  ;;  %v1953_v61 = vpop.f32.mrb[10].mxu0  ;;  %v1901_v62 = vpop.f32.mrb[5].mxu1 }
 0x2da   : > { %v1902_v12 = vadd.f32 %v1901_v62, %v1900_v0  ;;  %v1954_v4 = vpop.f32.mrb[11].mxu0 }
 0x2db   : > { %v1955_v5 = vadd.f32 %v1954_v4, %v1953_v61 }
 0x2dd   : > { %v1374_v7 = vadd.f32 %v1955_v5, %v1899_v52 }
 0x2f4   : > { %v1903_v8 = vpop.f32.mrb[6].mxu1 }
 0x2f5   : > { %v1956_v9 = vpop.f32.mrb[12].mxu0  ;;  %v1904_v50 = vpop.f32.mrb[7].mxu1 }
 0x2f6   : > { %v1905_v10 = vadd.f32 %v1904_v50, %v1903_v8  ;;  %v1957_v11 = vpop.f32.mrb[13].mxu0 }
 0x2f7   : > { %v1958_v13 = vadd.f32 %v1957_v11, %v1956_v9 }
 0x2f8   : > { %v1906_v14 = vpop.f32.mrb[8].mxu1 }
 0x2f9   : > { %v1379_v15 = vadd.f32 %v1958_v13, %v1902_v12  ;;  %v1959_v57 = vpop.f32.mrb[14].mxu0  ;;  %v1907_v17 = vpop.f32.mrb[9].mxu1 }
 0x2fa   : > { %v1908_v18 = vadd.f32 %v1907_v17, %v1906_v14  ;;  %v1960_v19 = vpop.f32.mrb[15].mxu0 }
 0x2fb   : > { %v1961_v20 = vadd.f32 %v1960_v19, %v1959_v57 }
 0x2fd   : > { %v1384_v39 = vadd.f32 %v1961_v20, %v1905_v10 }
 0x314   : > { %v1909_v21 = vpop.f32.mrb[10].mxu1 }
 0x315   : > { %v1962_v22 = vpop.f32.mrb[16].mxu0  ;;  %v1910_v23 = vpop.f32.mrb[11].mxu1 }
 0x316   : > { %v1911_v24 = vadd.f32 %v1910_v23, %v1909_v21  ;;  %v1963_v25 = vpop.f32.mrb[17].mxu0 }
 0x317   : > { %v1964_v26 = vadd.f32 %v1963_v25, %v1962_v22 }
 0x318   : > { %v1912_v27 = vpop.f32.mrb[12].mxu1 }
 0x319   : > { %v1389_v28 = vadd.f32 %v1964_v26, %v1908_v18  ;;  %v1965_v54 = vpop.f32.mrb[18].mxu0  ;;  %v1913_v56 = vpop.f32.mrb[13].mxu1 }
 0x31a   : > { %v1914_v29 = vadd.f32 %v1913_v56, %v1912_v27  ;;  %v1966_v30 = vpop.f32.mrb[19].mxu0 }
 0x31b   : > { %v1967_v31 = vadd.f32 %v1966_v30, %v1965_v54 }
 0x31d   : > { %v1394_v32 = vadd.f32 %v1967_v31, %v1911_v24 }
 0x333   : > { %v1915_v33 = vpop.f32.mrb[14].mxu1 }
 0x334   : > { %v1968_v34 = vpop.f32.mrb[20].mxu0  ;;  %v1916_v3 = vpop.f32.mrb[15].mxu1 }
 0x335   : > { %v1917_v2 = vadd.f32 %v1916_v3, %v1915_v33  ;;  %v1969_v35 = vpop.f32.mrb[21].mxu0 }
 0x336   : > { %v1970_v53 = vadd.f32 %v1969_v35, %v1968_v34 }
 0x337   : > { %v2006_v1 = vpop.f32.mrb[16].mxu1 }
 0x338   : > { %v1399_v6 = vadd.f32 %v1970_v53, %v1914_v29  ;;  %v1971_v16 = vpop.f32.mrb[22].mxu0  ;;  %v2007_v36 = vpop.f32.mrb[17].mxu1 }
 0x339   : > { %v1972_v37 = vpop.f32.mrb[23].mxu0  ;;  %v2008_v38 = vadd.f32 %v2007_v36, %v2006_v1 }
 0x33a   : > { %v1973_v40 = vadd.f32 %v1972_v37, %v1971_v16 }
 0x33b   : > { %v1474_v60 = vadd.f32 %v2008_v38, %v1369_v59  ;;  %v2009_v41 = vpop.f32.mrb[18].mxu1 }
 0x33c   : > { %v1404_v42 = vadd.f32 %v1973_v40, %v1917_v2  ;;  %v2062_v43 = vpop.f32.mrb[24].mxu0  ;;  %v2010_v44 = vpop.f32.mrb[19].mxu1 }
 0x33d   : > { %v2011_v45 = vadd.f32 %v2010_v44, %v2009_v41  ;;  %v2063_v46 = vpop.f32.mrb[25].mxu0 }
 0x33e   : > { %v2064_v63 = vadd.f32 %v2063_v46, %v2062_v43 }
 0x33f   : > { %v1479_v47 = vadd.f32 %v2011_v45, %v1374_v7  ;;  %v2012_v48 = vpop.f32.mrb[20].mxu1 }
 0x340   : > { %v2065_v49 = vpop.f32.mrb[26].mxu0  ;;  %v2013_v51 = vpop.f32.mrb[21].mxu1  ;;  %v1579_v52 = vadd.f32 %v2064_v63, %v1474_v60 }
 0x341   : > { %v2014_v55 = vadd.f32 %v2013_v51, %v2012_v48  ;;  %v2066_v58 = vpop.f32.mrb[27].mxu0 }
 0x342   : > { %v2067_v0 = vadd.f32 %v2066_v58, %v2065_v49 }
 0x343   : > { %v1484_v61 = vadd.f32 %v2014_v55, %v1379_v15  ;;  %v2015_v62 = vpop.f32.mrb[22].mxu1 }
 0x344   : > { %v2068_v12 = vpop.f32.mrb[28].mxu0  ;;  %v2016_v4 = vpop.f32.mrb[23].mxu1  ;;  %v1584_v59 = vadd.f32 %v2067_v0, %v1479_v47 }
 0x345   : > { %v2017_v5 = vadd.f32 %v2016_v4, %v2015_v62  ;;  %v2069_v8 = vpop.f32.mrb[29].mxu0 }
 0x346   : > { %v2070_v9 = vadd.f32 %v2069_v8, %v2068_v12 }
 0x347   : > { %v1489_v50 = vadd.f32 %v2017_v5, %v1384_v39  ;;  %v2018_v10 = vpop.f32.mrb[24].mxu1 }
 0x348   : > { %v2071_v11 = vpop.f32.mrb[30].mxu0  ;;  %v2019_v13 = vpop.f32.mrb[25].mxu1  ;;  %v1589_v7 = vadd.f32 %v2070_v9, %v1484_v61 }
 0x349   : > { %v2020_v14 = vadd.f32 %v2019_v13, %v2018_v10  ;;  %v2072_v57 = vpop.f32.mrb[31].mxu0 }
 0x34a   : > { %v2073_v17 = vadd.f32 %v2072_v57, %v2071_v11 }
 0x34b   : > { %v1494_v18 = vadd.f32 %v2020_v14, %v1389_v28  ;;  %v2021_v19 = vpop.f32.mrb[26].mxu1 }
 0x34c   : > { %v2074_v20 = vpop.f32.mrb[32].mxu0  ;;  %v2022_v21 = vpop.f32.mrb[27].mxu1  ;;  %v1594_v15 = vadd.f32 %v2073_v17, %v1489_v50 }
 0x34d   : > { %v2023_v22 = vadd.f32 %v2022_v21, %v2021_v19  ;;  %v2075_v23 = vpop.f32.mrb[33].mxu0 }
 0x34e   : > { %v2076_v24 = vadd.f32 %v2075_v23, %v2074_v20 }
 0x34f   : > { %v1499_v25 = vadd.f32 %v2023_v22, %v1394_v32  ;;  %v2024_v26 = vpop.f32.mrb[28].mxu1  ;;  %v1843_v32 = vld [vmem:[%s3315_s5] ss:$0 sm:$0xff] }
 0x350   : > { %v2077_v27 = vpop.f32.mrb[34].mxu0  ;;  %v2025_v54 = vpop.f32.mrb[29].mxu1  ;;  %v1599_v39 = vadd.f32 %v2076_v24, %v1494_v18 }
 0x351   : > { %v2026_v56 = vadd.f32 %v2025_v54, %v2024_v26  ;;  %v2078_v29 = vpop.f32.mrb[35].mxu0 }
 0x352   : > { %v2079_v30 = vadd.f32 %v2078_v29, %v2077_v27 }
 0x353   : > { %v1504_v31 = vadd.f32 %v2026_v56, %v1399_v6  ;;  %v2027_v33 = vpop.f32.mrb[30].mxu1  ;;  %v1844_v6 = vld [vmem:[%s3316_s6] ss:$0 sm:$0xff] }
 0x354   : > { %v2080_v34 = vpop.f32.mrb[36].mxu0  ;;  %v2028_v28 = vpop.f32.mrb[31].mxu1  ;;  %v1604_v3 = vadd.f32 %v2079_v30, %v1499_v25 }
 0x355   : > { %v2029_v2 = vadd.f32 %v2028_v28, %v2027_v33  ;;  %v2081_v35 = vpop.f32.mrb[37].mxu0 }
 0x356   : > { %v2082_v53 = vadd.f32 %v2081_v35, %v2080_v34 }
 0x357   : > { %v1509_v1 = vadd.f32 %v2029_v2, %v1404_v42  ;;  %v2166_v16 = vpop.f32.mrb[32].mxu1 }
 0x358   : > { %v2083_v36 = vpop.f32.mrb[38].mxu0  ;;  %v1689_v37 = vadd.f32 %v2166_v16, %v1584_v59  ;;  %v1683_v38 = vpop.f32.mrb[33].mxu1  ;;  %v1609_v40 = vadd.f32 %v2082_v53, %v1504_v31 }
 0x359   : > { %v2084_v60 = vpop.f32.mrb[39].mxu0  ;;  %v1684_v41 = vadd.f32 %v1683_v38, %v1579_v52 }
 0x35a   : > { %v1730_v43 = vmul.f32 %v1843_v32, %v1689_v37  ;;  %v2085_v44 = vadd.f32 %v2084_v60, %v2083_v36 }
 0x35b   : > { %v1729_v45 = vmul.f32 %v1843_v32, %v1684_v41  ;;  %v2169_v42 = vpop.f32.mrb[34].mxu1 }
 0x35c   : > { %v1745_v46 = vadd.f32 %v1844_v6, %v1730_v43  ;;  %v1699_v63 = vadd.f32 %v2169_v42, %v1594_v15  ;;  %v1693_v47 = vpop.f32.mrb[35].mxu1  ;;  %v1614_v48 = vadd.f32 %v2085_v44, %v1509_v1 }
 0x35d   : > { %v1744_v49 = vadd.f32 %v1844_v6, %v1729_v45  ;;  %v1694_v51 = vadd.f32 %v1693_v47, %v1589_v7 }
 0x35e   : > { %v1753_v55 = vmax.f32 %v1745_v46, 0.0  ;;  %v1732_v52 = vmul.f32 %v1843_v32, %v1699_v63 }
 0x35f   : > { %v1752_v58 = vmax.f32 %v1744_v49, 0.0  ;;  %v1731_v0 = vmul.f32 %v1843_v32, %v1694_v51  ;;  %v2172_v61 = vpop.f32.mrb[36].mxu1 }
 0x360   : > { %1761 = vst [vmem:[%s3297_s22 + $0x8] sm:$0xff] %v1753_v55  ;;  %v1747_v62 = vadd.f32 %v1844_v6, %v1732_v52  ;;  %v1709_v12 = vadd.f32 %v2172_v61, %v1604_v3  ;;  %v1703_v4 = vpop.f32.mrb[37].mxu1 }
 0x361   : > { %1760 = vst [vmem:[%s3297_s22] sm:$0xff] %v1752_v58  ;;  %v1746_v59 = vadd.f32 %v1844_v6, %v1731_v0  ;;  %v1704_v5 = vadd.f32 %v1703_v4, %v1599_v39 }
 0x362   : > { %v1755_v8 = vmax.f32 %v1747_v62, 0.0  ;;  %v1734_v9 = vmul.f32 %v1843_v32, %v1709_v12 }
 0x363   : > { %v1754_v50 = vmax.f32 %v1746_v59, 0.0  ;;  %v1733_v10 = vmul.f32 %v1843_v32, %v1704_v5  ;;  %v2175_v11 = vpop.f32.mrb[38].mxu1 }
 0x364   : > { %1763 = vst [vmem:[%s3297_s22 + $0x18] sm:$0xff] %v1755_v8  ;;  %v1749_v13 = vadd.f32 %v1844_v6, %v1734_v9  ;;  %v1719_v7 = vadd.f32 %v2175_v11, %v1614_v48  ;;  %v1713_v14 = vpop.f32.mrb[39].mxu1 }
 0x365   : > { %1762 = vst [vmem:[%s3297_s22 + $0x10] sm:$0xff] %v1754_v50  ;;  %v1748_v57 = vadd.f32 %v1844_v6, %v1733_v10  ;;  %v1714_v17 = vadd.f32 %v1713_v14, %v1609_v40 }
 0x366   : > { %v1757_v18 = vmax.f32 %v1749_v13, 0.0  ;;  %v1736_v19 = vmul.f32 %v1843_v32, %v1719_v7 }
 0x367   : > { %v1756_v20 = vmax.f32 %v1748_v57, 0.0  ;;  %v1735_v21 = vmul.f32 %v1843_v32, %v1714_v17 }
 0x368   : > { %1765 = vst [vmem:[%s3297_s22 + $0x28] sm:$0xff] %v1757_v18  ;;  %v1751_v15 = vadd.f32 %v1844_v6, %v1736_v19 }
 0x369   : > { %1764 = vst [vmem:[%s3297_s22 + $0x20] sm:$0xff] %v1756_v20  ;;  %v1750_v22 = vadd.f32 %v1844_v6, %v1735_v21 }
 0x36a   : > { %v1759_v23 = vmax.f32 %v1751_v15, 0.0 }
 0x36b   : > { %v1758_v24 = vmax.f32 %v1750_v22, 0.0 }
 0x36c   : > { %1767 = vst [vmem:[%s3297_s22 + $0x38] sm:$0xff] %v1759_v23 }
 0x36d   : > { %1766 = vst [vmem:[%s3297_s22 + $0x30] sm:$0xff] %v1758_v24 }
 0x36e PF: > { %s17_s24 = sadd.s32 1, %s2369_s24  }
 0x36f   : > { %p14_p4 = scmp.ge.s32.totalorder %s17_s24, 4  }
 0x371   :  { %16 = sbr.rel (!%p14_p4) target bundleno = 1 (0x1), region = 82 }

</bundles_post_ra>
